<compile_context>
chip_gen: v6e
topology: v6e:2x2x1
jax: 0.10.0
libtpu: 0.0.40
codegen_flags: <defaults>
</compile_context>

<pallas_src>
import functools
import math

import jax
import jax.numpy as jnp
from jax.experimental import pallas as pl
from jax.experimental.pallas import tpu as pltpu


# ----------------------------------------------------------------------------
# Fused ChebConv kernel: attention (k==0) + sum_k (L_k ⊙ attn) X W_k
# ----------------------------------------------------------------------------
def _cheb_conv_kernel(lr_ref, li_ref, mask_ref, xr_ref, xi_ref,
                      wproj_ref, ascal_ref,
                      w2r_ref, w2i_ref, w2s_ref, bias_ref,
                      outr_ref, outi_ref,
                      attn_scr, accr_scr, acci_scr):
    kk = pl.program_id(1)
    H = attn_scr.shape[0]
    C = xr_ref.shape[2]

    xr = xr_ref[0]                                    # (N, C) f32
    xi = xi_ref[0]

    f32dot = lambda a, b: jnp.dot(a, b, preferred_element_type=jnp.float32)

    # ---------------- attention: computed once per batch element ------------
    @pl.when(kk == 0)
    def _attention_and_init():
        # fused complex projection: [s1r | s1i | s2r | s2i] = [xr | xi] @ Wpack
        s = f32dot(xr, wproj_ref[:C, :]) + f32dot(xi, wproj_ref[C:, :])  # (N,4H)
        s2t = s[:, 2 * H:].T                                             # (2H,N)
        adj = mask_ref[0] > 0.5
        neg = jnp.float32(-1e9)
        a_re = ascal_ref[2 * H]          # CPReLU slope (real part)
        a_im = ascal_ref[2 * H + 1]      # CPReLU slope (imag part)
        for h in range(H):               # static, H is small
            sc_r = s[:, h:h + 1] + s2t[h:h + 1, :] + ascal_ref[h]
            sc_i = s[:, H + h:H + h + 1] + s2t[H + h:H + h + 1, :] + ascal_ref[H + h]
            sc_r = jnp.where(sc_r > 0, sc_r, a_re * sc_r)        # CPReLU
            sc_i = jnp.where(sc_i > 0, sc_i, a_im * sc_i)
            # reference semantics: mask real/imag with -1e9 BEFORE squaring
            sc_r = jnp.where(adj, sc_r, neg)
            sc_i = jnp.where(adj, sc_i, neg)
            mag = sc_r * sc_r + sc_i * sc_i
            m = jnp.max(mag, axis=-1, keepdims=True)
            e = jnp.exp(mag - m)
            inv = pl.reciprocal(jnp.sum(e, axis=-1, keepdims=True), approx=True)
            attn_scr[h] = e * inv
        accr_scr[...] = jnp.zeros(accr_scr.shape, accr_scr.dtype)
        acci_scr[...] = jnp.zeros(acci_scr.shape, acci_scr.dtype)

    # ---------------- Chebyshev term kk:  (L_k ⊙ A_h) X W_k -----------------
    lr = lr_ref[0, 0]                                 # (N, N) f32
    li = li_ref[0, 0]
    xr_b = xr.astype(jnp.bfloat16)
    xi_b = xi.astype(jnp.bfloat16)
    xs_b = (xr + xi).astype(jnp.bfloat16)

    lxr_parts, lxi_parts = [], []
    for h in range(H):                                # static, H small
        a = attn_scr[h]                               # (N, N) f32
        mr = lr * a                                   # elementwise stays f32
        mi = li * a
        ms = mr + mi
        # Gauss 3-mult complex matmul: bf16 MXU operands, f32 accumulation
        t1 = jnp.dot(mr.astype(jnp.bfloat16), xr_b, preferred_element_type=jnp.float32)
        t2 = jnp.dot(mi.astype(jnp.bfloat16), xi_b, preferred_element_type=jnp.float32)
        t3 = jnp.dot(ms.astype(jnp.bfloat16), xs_b, preferred_element_type=jnp.float32)
        lxr_parts.append(t1 - t2)                     # real part  (N, C)
        lxi_parts.append(t3 - t1 - t2)                # imag part  (N, C)

    lxr = jnp.concatenate(lxr_parts, axis=1)          # (N, H*C) f32
    lxi = jnp.concatenate(lxi_parts, axis=1)
    lxs = lxr + lxi

    # second stage: block-diagonal packed weights cover all heads in one matmul
    # and yield the output directly in the reference (p*H + h) lane-dense order.
    u1 = jnp.dot(lxr.astype(jnp.bfloat16), w2r_ref[0], preferred_element_type=jnp.float32)
    u2 = jnp.dot(lxi.astype(jnp.bfloat16), w2i_ref[0], preferred_element_type=jnp.float32)
    u3 = jnp.dot(lxs.astype(jnp.bfloat16), w2s_ref[0], preferred_element_type=jnp.float32)
    accr_scr[...] = accr_scr[...] + (u1 - u2)
    acci_scr[...] = acci_scr[...] + (u3 - u1 - u2)

    # single lane-dense store at the last k (bias added in-kernel)
    @pl.when(kk == pl.num_programs(1) - 1)
    def _finalize():
        outr_ref[0] = accr_scr[...] + bias_ref[0:1, :]
        outi_ref[0] = acci_scr[...] + bias_ref[1:2, :]


def cheb_conv_forward(p, xr, xi, l_real, l_imag, adj_mask):
    B, N, C = xr.shape
    H = p['num_heads']
    PH = p['out_c'] * H
    Kp1 = l_real.shape[1]
    out_sds = jax.ShapeDtypeStruct((B, N, PH), jnp.float32)
    outr, outi = pl.pallas_call(
        _cheb_conv_kernel,
        out_shape=[out_sds, out_sds],
        grid=(B, Kp1),
        in_specs=[
            pl.BlockSpec((1, 1, N, N), lambda b, k: (b, k, 0, 0)),    # L_real_k
            pl.BlockSpec((1, 1, N, N), lambda b, k: (b, k, 0, 0)),    # L_imag_k
            pl.BlockSpec((1, N, N), lambda b, k: (b, 0, 0)),          # adjacency mask
            pl.BlockSpec((1, N, C), lambda b, k: (b, 0, 0)),          # X real
            pl.BlockSpec((1, N, C), lambda b, k: (b, 0, 0)),          # X imag
            pl.BlockSpec((2 * C, 4 * H), lambda b, k: (0, 0)),        # packed attn proj
            pl.BlockSpec(memory_space=pltpu.MemorySpace.SMEM),        # attn bias + alphas
            pl.BlockSpec((1, H * C, PH), lambda b, k: (k, 0, 0)),     # W_k real  (bf16 blkdiag)
            pl.BlockSpec((1, H * C, PH), lambda b, k: (k, 0, 0)),     # W_k imag
            pl.BlockSpec((1, H * C, PH), lambda b, k: (k, 0, 0)),     # W_k real+imag (Gauss)
            pl.BlockSpec((2, PH), lambda b, k: (0, 0)),               # output bias
        ],
        out_specs=[
            pl.BlockSpec((1, N, PH), lambda b, k: (b, 0, 0)),
            pl.BlockSpec((1, N, PH), lambda b, k: (b, 0, 0)),
        ],
        scratch_shapes=[
            pltpu.VMEM((H, N, N), jnp.float32),   # attention weights (held across k)
            pltpu.VMEM((N, PH), jnp.float32),     # real accumulator
            pltpu.VMEM((N, PH), jnp.float32),     # imag accumulator
        ],
        compiler_params=pltpu.CompilerParams(
            dimension_semantics=("parallel", "arbitrary"),
            vmem_limit_bytes=48 * 1024 * 1024),
    )(l_real, l_imag, adj_mask, xr, xi,
      p['attn_wproj'], p['attn_scal'],
      p['w2r_blk'], p['w2i_blk'], p['w2s_blk'], p['bias_cat'])
    return outr, outi


# ----------------------------------------------------------------------------
# FrequencySelfAttention + CVPolarTanh + final CVLinear (tiny head kernel)
# ----------------------------------------------------------------------------
def _head_kernel(emb_ref, fw1_ref, fb1_ref, fw2_ref, fb2_ref, wcat_ref, bcat_ref,
                 outr_ref, outi_ref):
    B, NB, D = emb_ref.shape
    O = outr_ref.shape[1]
    dot = lambda a, b: jnp.dot(a, b, preferred_element_type=jnp.float32)
    fw1, fb1 = fw1_ref[...], fb1_ref[...]
    fw2, fb2 = fw2_ref[...], fb2_ref[...]

    # TODO(synk): could be collapsed into a single (B*NB, D) matmul; NB is tiny
    # so the per-band loop is kept for lowering robustness.
    logit_cols = []
    for nb in range(NB):                                  # static, small
        h1 = jnp.tanh(dot(emb_ref[:, nb, :], fw1) + fb1)  # (B, Hd)
        logit_cols.append(dot(h1, fw2) + fb2)             # (B, 1)
    logits = jnp.concatenate(logit_cols, axis=1)          # (B, NB)

    m = jnp.max(logits, axis=1, keepdims=True)
    e = jnp.exp(logits - m)
    w = e * pl.reciprocal(jnp.sum(e, axis=1, keepdims=True), approx=True)

    combined = jnp.zeros((B, D), jnp.float32)
    for nb in range(NB):
        combined = combined + emb_ref[:, nb, :] * w[:, nb:nb + 1]

    # CVPolarTanh with exactly-zero imaginary part: tanh(|z|)e^{i·angle} = tanh(x)
    tr = jnp.tanh(combined)

    # final CVLinear (zero imaginary input) — real & imag weights packed once
    out = dot(tr, wcat_ref[...]) + bcat_ref[...]          # (B, 2O)
    outr_ref[...] = out[:, :O]
    outi_ref[...] = out[:, O:]


def head_forward(p, emb):
    B = emb.shape[0]
    O = p['fc_wcat'].shape[1] // 2
    out_sds = jax.ShapeDtypeStruct((B, O), jnp.float32)
    return pl.pallas_call(
        _head_kernel, out_shape=[out_sds, out_sds],
    )(emb, p['fa_w1'], p['fa_b1'], p['fa_w2'], p['fa_b2'],
      p['fc_wcat'], p['fc_bcat'])


# ----------------------------------------------------------------------------
# Plain-JAX glue: magnetic Laplacian + Chebyshev polynomials (preprocessing)
# ----------------------------------------------------------------------------
def magnetic_cheb_poly(A, q, K):
    # decomp(A, q, norm=True, laplacian=True, max_eigen=2, gcn_appr=True)
    N = A.shape[0]
    eye = jnp.eye(N, dtype=A.dtype)
    A = A + eye                               # gcn approximation: add self loops
    A_sym = 0.5 * (A + A.T)
    d = jnp.sum(A_sym, axis=0)
    d = jnp.where(d == 0, 1.0, d)
    d_is = d ** -0.5
    A_norm = (d_is[:, None] * A_sym * d_is[None, :]).astype(jnp.complex64)
    theta = 2.0 * jnp.pi * q * (A - A.T)
    phase = jnp.exp(1j * theta.astype(jnp.complex64))
    eye_c = eye.astype(jnp.complex64)
    L = eye_c - phase * A_norm
    L = (2.0 / 2.0) * L - eye_c               # rescale with max_eigen = 2

    # cheb_poly: T_0 = I, T_1 = L, T_k = 2 L T_{k-1} - T_{k-2}
    polys = [eye_c, L]
    for _ in range(2, K + 1):
        polys.append(2.0 * (L @ polys[-1]) - polys[-2])
    return jnp.stack(polys[:K + 1], axis=0)


def chebnet_forward(params, real, imag, graph, layer=2):
    cfg = params['config']
    q, K = cfg['q'], cfg['K']
    B, num_bands, N, _ = graph.shape

    cheb = jax.vmap(jax.vmap(lambda A: magnetic_cheb_poly(A, q, K)))(graph)
    # cheb: (B, num_bands, K+1, N, N) complex64

    band_embs = []
    for i in range(num_bands):
        Lr = jnp.real(cheb[:, i]).astype(jnp.float32)
        Li = jnp.imag(cheb[:, i]).astype(jnp.float32)
        # adjacency mask precomputed once per band (same tensor as the reference)
        adj_mask = (jnp.sum(jnp.abs(Lr), axis=1) > 1e-9).astype(jnp.float32)
        br_, bi_ = cheb_conv_forward(params['conv1'], real, imag, Lr, Li, adj_mask)
        if layer > 1:
            br_, bi_ = cheb_conv_forward(params['conv2'], br_, bi_, Lr, Li, adj_mask)
        pr = jnp.mean(br_, axis=1)
        pi = jnp.mean(bi_, axis=1)
        band_embs.append(jnp.sqrt(pr * pr + pi * pi))     # |pooled complex|

    all_emb = jnp.stack(band_embs, axis=1)                # (B, num_bands, D)
    out_r, out_i = head_forward(params['head'], all_emb)
    return out_r, out_i


# ----------------------------------------------------------------------------
# Deterministic parameter init (+ host-side weight packing for the kernels)
# ----------------------------------------------------------------------------
def _uniform(key, shape, scale):
    return jax.random.uniform(key, shape, jnp.float32, minval=-scale, maxval=scale)


def _pack_attn_proj(attn_wr, attn_wi, in_c):
    # [xr | xi] @ wproj == [s1r | s1i | s2r | s2i]  (exact complex-linear split)
    w1r, w2r = attn_wr[:in_c], attn_wr[in_c:]
    w1i, w2i = attn_wi[:in_c], attn_wi[in_c:]
    top = jnp.concatenate([w1r, w1i, w2r, w2i], axis=1)
    bot = jnp.concatenate([-w1i, w1r, -w2i, w2r], axis=1)
    return jnp.concatenate([top, bot], axis=0)            # (2C, 4H)


def _pack_block_diag(w, num_heads, in_c, out_c):
    # w: (K+1, in_c, out_c*num_heads), reference flat column = p*num_heads + h.
    # Block-diagonal layout so [LX_0 | ... | LX_{H-1}] @ blk lands directly in
    # the reference column order with zero in-kernel transposes.
    Kp1 = w.shape[0]
    blk = jnp.zeros((Kp1, num_heads * in_c, out_c * num_heads), w.dtype)
    for h in range(num_heads):
        cols = jnp.arange(out_c) * num_heads + h
        blk = blk.at[:, h * in_c:(h + 1) * in_c, cols].set(w[:, :, cols])
    return blk


def init_chebconv(key, in_c, out_c, K, num_heads):
    actual = out_c * num_heads
    ks = jax.random.split(key, 6)
    stdv = 1.0 / math.sqrt(actual)
    w_real = _uniform(ks[0], (K + 1, in_c, actual), stdv)
    w_imag = _uniform(ks[1], (K + 1, in_c, actual), stdv)
    a_scale = 1.0 / math.sqrt(2 * in_c)
    attn_wr = _uniform(ks[2], (2 * in_c, num_heads), a_scale)
    attn_wi = _uniform(ks[3], (2 * in_c, num_heads), a_scale)
    attn_br = _uniform(ks[4], (num_heads,), a_scale)
    attn_bi = _uniform(ks[5], (num_heads,), a_scale)

    w2r_blk = _pack_block_diag(w_real, num_heads, in_c, out_c)
    w2i_blk = _pack_block_diag(w_imag, num_heads, in_c, out_c)

    return dict(
        num_heads=num_heads,
        out_c=out_c,
        attn_wproj=_pack_attn_proj(attn_wr, attn_wi, in_c),
        # SMEM scalars: [bias_real(H) | bias_imag(H) | prelu_alpha_re | prelu_alpha_im]
        attn_scal=jnp.concatenate(
            [attn_br, attn_bi, jnp.array([0.25, 0.25], jnp.float32)]),
        # bf16 MXU operands (f32 accumulation inside the kernel)
        w2r_blk=w2r_blk.astype(jnp.bfloat16),
        w2i_blk=w2i_blk.astype(jnp.bfloat16),
        w2s_blk=(w2r_blk + w2i_blk).astype(jnp.bfloat16),   # Gauss (Wr + Wi), summed in f32
        bias_cat=jnp.zeros((2, actual), jnp.float32),
    )


def init_chebnet(key, in_c, K, q, num_heads, num_filters, proto_dim):
    D = num_filters * num_heads           # concat_heads=True
    Hd = max(D // 2, 1)
    ks = jax.random.split(key, 10)
    head = dict(
        fa_w1=_uniform(ks[2], (D, Hd), 1.0 / math.sqrt(D)),
        fa_b1=_uniform(ks[3], (1, Hd), 1.0 / math.sqrt(D)),
        fa_w2=_uniform(ks[4], (Hd, 1), 1.0 / math.sqrt(Hd)),
        fa_b2=_uniform(ks[5], (1, 1), 1.0 / math.sqrt(Hd)),
        fc_wcat=jnp.concatenate([
            _uniform(ks[6], (D, proto_dim), 1.0 / math.sqrt(D)),
            _uniform(ks[7], (D, proto_dim), 1.0 / math.sqrt(D))], axis=1),
        fc_bcat=jnp.concatenate([
            _uniform(ks[8], (1, proto_dim), 1.0 / math.sqrt(D)),
            _uniform(ks[9], (1, proto_dim), 1.0 / math.sqrt(D))], axis=1),
    )
    return dict(
        config=dict(q=q, K=K),
        conv1=init_chebconv(ks[0], in_c, num_filters, K, num_heads),
        conv2=init_chebconv(ks[1], D, num_filters, K, num_heads),
        head=head,
    )


# ----------------------------------------------------------------------------
if __name__ == "__main__":
    B, N, C_in = 2, 8, 4
    K, num_heads, num_filters = 2, 2, 4
    num_bands = 3
    q = 0.25
    proto_dim = 5

    key = jax.random.PRNGKey(0)
    k_par, k_r, k_i, k_g = jax.random.split(key, 4)

    params = init_chebnet(k_par, C_in, K, q, num_heads, num_filters, proto_dim)
    real = jax.random.normal(k_r, (B, N, C_in), jnp.float32)
    imag = jax.random.normal(k_i, (B, N, C_in), jnp.float32)
    graph = (jax.random.uniform(k_g, (B, num_bands, N, N)) > 0.5).astype(jnp.float32)

    fwd = jax.jit(functools.partial(chebnet_forward, params))
    out_r, out_i = fwd(real, imag, graph)
    jax.block_until_ready((out_r, out_i))

    assert out_r.shape == (B, proto_dim) and out_i.shape == (B, proto_dim)
    assert bool(jnp.all(jnp.isfinite(out_r))) and bool(jnp.all(jnp.isfinite(out_i)))
    print("KERNEL_OK")
</pallas_src>

<mosaic_0001>
module attributes {stable_mosaic.version = 11 : i64} {
  func.func @_head_kernel(%arg0: memref<2x3x8xf32, #tpu.memory_space<vmem>>, %arg1: memref<8x4xf32, #tpu.memory_space<vmem>>, %arg2: memref<1x4xf32, #tpu.memory_space<vmem>>, %arg3: memref<4x1xf32, #tpu.memory_space<vmem>>, %arg4: memref<1x1xf32, #tpu.memory_space<vmem>>, %arg5: memref<8x10xf32, #tpu.memory_space<vmem>>, %arg6: memref<1x10xf32, #tpu.memory_space<vmem>>, %arg7: memref<2x5xf32, #tpu.memory_space<vmem>>, %arg8: memref<2x5xf32, #tpu.memory_space<vmem>>) attributes {dimension_semantics = [], scalar_prefetch = 0 : i64, scratch_operands = 0 : i64, tpu.core_type = #tpu.core_type<tc>} {
    %c0 = arith.constant 0 : index
    %c0_0 = arith.constant 0 : index
    %0 = vector.load %arg1[%c0, %c0_0] : memref<8x4xf32, #tpu.memory_space<vmem>>, vector<8x4xf32>
    %c0_1 = arith.constant 0 : index
    %c0_2 = arith.constant 0 : index
    %1 = vector.load %arg2[%c0_1, %c0_2] : memref<1x4xf32, #tpu.memory_space<vmem>>, vector<1x4xf32>
    %c0_3 = arith.constant 0 : index
    %c0_4 = arith.constant 0 : index
    %2 = vector.load %arg3[%c0_3, %c0_4] : memref<4x1xf32, #tpu.memory_space<vmem>>, vector<4x1xf32>
    %c0_5 = arith.constant 0 : index
    %c0_6 = arith.constant 0 : index
    %3 = vector.load %arg4[%c0_5, %c0_6] : memref<1x1xf32, #tpu.memory_space<vmem>>, vector<1x1xf32>
    %c0_7 = arith.constant 0 : index
    %c0_8 = arith.constant 0 : index
    %c0_9 = arith.constant 0 : index
    %4 = vector.load %arg0[%c0_7, %c0_8, %c0_9] : memref<2x3x8xf32, #tpu.memory_space<vmem>>, vector<2x1x8xf32>
    %5 = vector.shape_cast %4 : vector<2x1x8xf32> to vector<2x8xf32>
    %cst = arith.constant dense<0.000000e+00> : vector<2x4xf32>
    %6 = tpu.matmul %5, %0, %cst {dimension_numbers = #tpu.dot_dimension_numbers<[1], [0], [0], [1], [0, 0, 1, 1], [], []>} : vector<2x8xf32>, vector<8x4xf32>, vector<2x4xf32> -> vector<2x4xf32>
    %7 = vector.broadcast %1 : vector<1x4xf32> to vector<2x4xf32>
    %8 = arith.addf %6, %7 : vector<2x4xf32>
    %9 = math.tanh %8 : vector<2x4xf32>
    %cst_10 = arith.constant dense<0.000000e+00> : vector<2x1xf32>
    %10 = tpu.matmul %9, %2, %cst_10 {dimension_numbers = #tpu.dot_dimension_numbers<[1], [0], [0], [1], [0, 0, 1, 1], [], []>} : vector<2x4xf32>, vector<4x1xf32>, vector<2x1xf32> -> vector<2x1xf32>
    %11 = vector.broadcast %3 : vector<1x1xf32> to vector<2x1xf32>
    %12 = arith.addf %10, %11 : vector<2x1xf32>
    %c0_11 = arith.constant 0 : index
    %c1 = arith.constant 1 : index
    %c0_12 = arith.constant 0 : index
    %13 = vector.load %arg0[%c0_11, %c1, %c0_12] : memref<2x3x8xf32, #tpu.memory_space<vmem>>, vector<2x1x8xf32>
    %14 = vector.shape_cast %13 : vector<2x1x8xf32> to vector<2x8xf32>
    %cst_13 = arith.constant dense<0.000000e+00> : vector<2x4xf32>
    %15 = tpu.matmul %14, %0, %cst_13 {dimension_numbers = #tpu.dot_dimension_numbers<[1], [0], [0], [1], [0, 0, 1, 1], [], []>} : vector<2x8xf32>, vector<8x4xf32>, vector<2x4xf32> -> vector<2x4xf32>
    %16 = vector.broadcast %1 : vector<1x4xf32> to vector<2x4xf32>
    %17 = arith.addf %15, %16 : vector<2x4xf32>
    %18 = math.tanh %17 : vector<2x4xf32>
    %cst_14 = arith.constant dense<0.000000e+00> : vector<2x1xf32>
    %19 = tpu.matmul %18, %2, %cst_14 {dimension_numbers = #tpu.dot_dimension_numbers<[1], [0], [0], [1], [0, 0, 1, 1], [], []>} : vector<2x4xf32>, vector<4x1xf32>, vector<2x1xf32> -> vector<2x1xf32>
    %20 = vector.broadcast %3 : vector<1x1xf32> to vector<2x1xf32>
    %21 = arith.addf %19, %20 : vector<2x1xf32>
    %c0_15 = arith.constant 0 : index
    %c2 = arith.constant 2 : index
    %c0_16 = arith.constant 0 : index
    %22 = vector.load %arg0[%c0_15, %c2, %c0_16] : memref<2x3x8xf32, #tpu.memory_space<vmem>>, vector<2x1x8xf32>
    %23 = vector.shape_cast %22 : vector<2x1x8xf32> to vector<2x8xf32>
    %cst_17 = arith.constant dense<0.000000e+00> : vector<2x4xf32>
    %24 = tpu.matmul %23, %0, %cst_17 {dimension_numbers = #tpu.dot_dimension_numbers<[1], [0], [0], [1], [0, 0, 1, 1], [], []>} : vector<2x8xf32>, vector<8x4xf32>, vector<2x4xf32> -> vector<2x4xf32>
    %25 = vector.broadcast %1 : vector<1x4xf32> to vector<2x4xf32>
    %26 = arith.addf %24, %25 : vector<2x4xf32>
    %27 = math.tanh %26 : vector<2x4xf32>
    %cst_18 = arith.constant dense<0.000000e+00> : vector<2x1xf32>
    %28 = tpu.matmul %27, %2, %cst_18 {dimension_numbers = #tpu.dot_dimension_numbers<[1], [0], [0], [1], [0, 0, 1, 1], [], []>} : vector<2x4xf32>, vector<4x1xf32>, vector<2x1xf32> -> vector<2x1xf32>
    %29 = vector.broadcast %3 : vector<1x1xf32> to vector<2x1xf32>
    %30 = arith.addf %28, %29 : vector<2x1xf32>
    %31 = tpu.concatenate %12, %21, %30 in 1 : vector<2x1xf32>, vector<2x1xf32>, vector<2x1xf32> -> vector<2x3xf32>
    %cst_19 = arith.constant dense<0xFF800000> : vector<2xf32>
    %32 = vector.multi_reduction <maximumf>, %31, %cst_19 [1] : vector<2x3xf32> to vector<2xf32>
    %33 = vector.shape_cast %32 : vector<2xf32> to vector<2x1xf32>
    %34 = vector.broadcast %33 : vector<2x1xf32> to vector<2x3xf32>
    %35 = arith.subf %31, %34 : vector<2x3xf32>
    %36 = math.exp %35 : vector<2x3xf32>
    %cst_20 = arith.constant dense<0.000000e+00> : vector<2xf32>
    %37 = vector.multi_reduction <add>, %36, %cst_20 [1] : vector<2x3xf32> to vector<2xf32>
    %38 = vector.shape_cast %37 : vector<2xf32> to vector<2x1xf32>
    %39 = tpu.reciprocal %38 {approx = true} : vector<2x1xf32> -> vector<2x1xf32>
    %40 = vector.broadcast %39 : vector<2x1xf32> to vector<2x3xf32>
    %41 = arith.mulf %36, %40 : vector<2x3xf32>
    %cst_21 = arith.constant 0.000000e+00 : f32
    %42 = vector.broadcast %cst_21 : f32 to vector<2x8xf32>
    %c0_22 = arith.constant 0 : index
    %c0_23 = arith.constant 0 : index
    %c0_24 = arith.constant 0 : index
    %43 = vector.load %arg0[%c0_22, %c0_23, %c0_24] : memref<2x3x8xf32, #tpu.memory_space<vmem>>, vector<2x1x8xf32>
    %44 = vector.shape_cast %43 : vector<2x1x8xf32> to vector<2x8xf32>
    %45 = vector.extract_strided_slice %41 {offsets = [0, 0], sizes = [2, 1], strides = [1, 1]} : vector<2x3xf32> to vector<2x1xf32>
    %46 = vector.broadcast %45 : vector<2x1xf32> to vector<2x8xf32>
    %47 = arith.mulf %44, %46 : vector<2x8xf32>
    %48 = arith.addf %42, %47 : vector<2x8xf32>
    %c0_25 = arith.constant 0 : index
    %c1_26 = arith.constant 1 : index
    %c0_27 = arith.constant 0 : index
    %49 = vector.load %arg0[%c0_25, %c1_26, %c0_27] : memref<2x3x8xf32, #tpu.memory_space<vmem>>, vector<2x1x8xf32>
    %50 = vector.shape_cast %49 : vector<2x1x8xf32> to vector<2x8xf32>
    %51 = vector.extract_strided_slice %41 {offsets = [0, 1], sizes = [2, 1], strides = [1, 1]} : vector<2x3xf32> to vector<2x1xf32>
    %52 = vector.broadcast %51 : vector<2x1xf32> to vector<2x8xf32>
    %53 = arith.mulf %50, %52 : vector<2x8xf32>
    %54 = arith.addf %48, %53 : vector<2x8xf32>
    %c0_28 = arith.constant 0 : index
    %c2_29 = arith.constant 2 : index
    %c0_30 = arith.constant 0 : index
    %55 = vector.load %arg0[%c0_28, %c2_29, %c0_30] : memref<2x3x8xf32, #tpu.memory_space<vmem>>, vector<2x1x8xf32>
    %56 = vector.shape_cast %55 : vector<2x1x8xf32> to vector<2x8xf32>
    %57 = vector.extract_strided_slice %41 {offsets = [0, 2], sizes = [2, 1], strides = [1, 1]} : vector<2x3xf32> to vector<2x1xf32>
    %58 = vector.broadcast %57 : vector<2x1xf32> to vector<2x8xf32>
    %59 = arith.mulf %56, %58 : vector<2x8xf32>
    %60 = arith.addf %54, %59 : vector<2x8xf32>
    %61 = math.tanh %60 : vector<2x8xf32>
    %c0_31 = arith.constant 0 : index
    %c0_32 = arith.constant 0 : index
    %62 = vector.load %arg5[%c0_31, %c0_32] : memref<8x10xf32, #tpu.memory_space<vmem>>, vector<8x10xf32>
    %cst_33 = arith.constant dense<0.000000e+00> : vector<2x10xf32>
    %63 = tpu.matmul %61, %62, %cst_33 {dimension_numbers = #tpu.dot_dimension_numbers<[1], [0], [0], [1], [0, 0, 1, 1], [], []>} : vector<2x8xf32>, vector<8x10xf32>, vector<2x10xf32> -> vector<2x10xf32>
    %c0_34 = arith.constant 0 : index
    %c0_35 = arith.constant 0 : index
    %64 = vector.load %arg6[%c0_34, %c0_35] : memref<1x10xf32, #tpu.memory_space<vmem>>, vector<1x10xf32>
    %65 = vector.broadcast %64 : vector<1x10xf32> to vector<2x10xf32>
    %66 = arith.addf %63, %65 : vector<2x10xf32>
    %67 = vector.extract_strided_slice %66 {offsets = [0, 0], sizes = [2, 5], strides = [1, 1]} : vector<2x10xf32> to vector<2x5xf32>
    %c0_36 = arith.constant 0 : index
    %c0_37 = arith.constant 0 : index
    %68 = vector.load %arg7[%c0_36, %c0_37] : memref<2x5xf32, #tpu.memory_space<vmem>>, vector<2x5xf32>
    tpu.vector_store %arg7[%c0_36, %c0_37], %67 {strides = array<i32>} : memref<2x5xf32, #tpu.memory_space<vmem>>, vector<2x5xf32>,
    %69 = vector.extract_strided_slice %66 {offsets = [0, 5], sizes = [2, 5], strides = [1, 1]} : vector<2x10xf32> to vector<2x5xf32>
    %c0_38 = arith.constant 0 : index
    %c0_39 = arith.constant 0 : index
    %70 = vector.load %arg8[%c0_38, %c0_39] : memref<2x5xf32, #tpu.memory_space<vmem>>, vector<2x5xf32>
    tpu.vector_store %arg8[%c0_38, %c0_39], %69 {strides = array<i32>} : memref<2x5xf32, #tpu.memory_space<vmem>>, vector<2x5xf32>,
    return
  }
}

module attributes {stable_mosaic.version = 11 : i64} {
  func.func @_cheb_conv_kernel(%arg0: i32, %arg1: i32, %arg2: memref<1x1x8x8xf32, #tpu.memory_space<vmem>>, %arg3: memref<1x1x8x8xf32, #tpu.memory_space<vmem>>, %arg4: memref<1x8x8xf32, #tpu.memory_space<vmem>>, %arg5: memref<1x8x4xf32, #tpu.memory_space<vmem>>, %arg6: memref<1x8x4xf32, #tpu.memory_space<vmem>>, %arg7: memref<8x8xf32, #tpu.memory_space<vmem>>, %arg8: memref<6xf32, #tpu.memory_space<smem>>, %arg9: memref<1x8x8xbf16, #tpu.memory_space<vmem>>, %arg10: memref<1x8x8xbf16, #tpu.memory_space<vmem>>, %arg11: memref<1x8x8xbf16, #tpu.memory_space<vmem>>, %arg12: memref<2x8xf32, #tpu.memory_space<vmem>>, %arg13: memref<1x8x8xf32, #tpu.memory_space<vmem>>, %arg14: memref<1x8x8xf32, #tpu.memory_space<vmem>>, %arg15: memref<2x8x8xf32, #tpu.memory_space<vmem>>, %arg16: memref<8x8xf32, #tpu.memory_space<vmem>>, %arg17: memref<8x8xf32, #tpu.memory_space<vmem>>) attributes {dimension_semantics = [#tpu.dimension_semantics<parallel>, #tpu.dimension_semantics<arbitrary>], iteration_bounds = array<i64: 2, 3>, scalar_prefetch = 0 : i64, scratch_operands = 3 : i64, tpu.core_type = #tpu.core_type<tc>, window_params = [{transform_indices = @transform_0, window_bounds = array<i64: 1, 1, 8, 8>}, {transform_indices = @transform_1, window_bounds = array<i64: 1, 1, 8, 8>}, {transform_indices = @transform_2, window_bounds = array<i64: 1, 8, 8>}, {transform_indices = @transform_3, window_bounds = array<i64: 1, 8, 4>}, {transform_indices = @transform_4, window_bounds = array<i64: 1, 8, 4>}, {pipeline_mode = #tpu.pipeline_mode<synchronous>, transform_indices = @transform_5, window_bounds = array<i64: 8, 8>}, {transform_indices = @transform_6, window_bounds = array<i64: 6>}, {transform_indices = @transform_7, window_bounds = array<i64: 1, 8, 8>}, {transform_indices = @transform_8, window_bounds = array<i64: 1, 8, 8>}, {transform_indices = @transform_9, window_bounds = array<i64: 1, 8, 8>}, {pipeline_mode = #tpu.pipeline_mode<synchronous>, transform_indices = @transform_10, window_bounds = array<i64: 2, 8>}, {transform_indices = @transform_11, window_bounds = array<i64: 1, 8, 8>}, {transform_indices = @transform_12, window_bounds = array<i64: 1, 8, 8>}]} {
    %c0 = arith.constant 0 : index
    %c0_0 = arith.constant 0 : index
    %c0_1 = arith.constant 0 : index
    %0 = vector.load %arg5[%c0, %c0_0, %c0_1] : memref<1x8x4xf32, #tpu.memory_space<vmem>>, vector<1x8x4xf32>
    %1 = vector.shape_cast %0 : vector<1x8x4xf32> to vector<8x4xf32>
    %c0_2 = arith.constant 0 : index
    %c0_3 = arith.constant 0 : index
    %c0_4 = arith.constant 0 : index
    %2 = vector.load %arg6[%c0_2, %c0_3, %c0_4] : memref<1x8x4xf32, #tpu.memory_space<vmem>>, vector<1x8x4xf32>
    %3 = vector.shape_cast %2 : vector<1x8x4xf32> to vector<8x4xf32>
    %c0_i32 = arith.constant 0 : i32
    %4 = arith.cmpi eq, %arg1, %c0_i32 : i32
    %5 = arith.extui %4 : i1 to i32
    %c0_i32_5 = arith.constant 0 : i32
    %6 = arith.cmpi ne, %5, %c0_i32_5 : i32
    scf.if %6 {
      %c0_45 = arith.constant 0 : index
      %c0_46 = arith.constant 0 : index
      %70 = vector.load %arg7[%c0_45, %c0_46] : memref<8x8xf32, #tpu.memory_space<vmem>>, vector<4x8xf32>
      %cst_47 = arith.constant dense<0.000000e+00> : vector<8x8xf32>
      %71 = tpu.matmul %1, %70, %cst_47 {dimension_numbers = #tpu.dot_dimension_numbers<[1], [0], [0], [1], [0, 0, 1, 1], [], []>} : vector<8x4xf32>, vector<4x8xf32>, vector<8x8xf32> -> vector<8x8xf32>
      %c4 = arith.constant 4 : index
      %c0_48 = arith.constant 0 : index
      %72 = vector.load %arg7[%c4, %c0_48] : memref<8x8xf32, #tpu.memory_space<vmem>>, vector<4x8xf32>
      %cst_49 = arith.constant dense<0.000000e+00> : vector<8x8xf32>
      %73 = tpu.matmul %3, %72, %cst_49 {dimension_numbers = #tpu.dot_dimension_numbers<[1], [0], [0], [1], [0, 0, 1, 1], [], []>} : vector<8x4xf32>, vector<4x8xf32>, vector<8x8xf32> -> vector<8x8xf32>
      %74 = arith.addf %71, %73 : vector<8x8xf32>
      %75 = vector.extract_strided_slice %74 {offsets = [0, 4], sizes = [8, 4], strides = [1, 1]} : vector<8x8xf32> to vector<8x4xf32>
      %76 = tpu.transpose %75, [1, 0] : vector<8x4xf32> -> vector<4x8xf32>
      %c0_50 = arith.constant 0 : index
      %c0_51 = arith.constant 0 : index
      %c0_52 = arith.constant 0 : index
      %77 = vector.load %arg4[%c0_50, %c0_51, %c0_52] : memref<1x8x8xf32, #tpu.memory_space<vmem>>, vector<1x8x8xf32>
      %78 = vector.shape_cast %77 : vector<1x8x8xf32> to vector<8x8xf32>
      %cst_53 = arith.constant 5.000000e-01 : f32
      %79 = vector.broadcast %cst_53 : f32 to vector<8x8xf32>
      %80 = arith.cmpf ogt, %78, %79 : vector<8x8xf32>
      %c4_54 = arith.constant 4 : index
      %81 = memref.load %arg8[%c4_54] : memref<6xf32, #tpu.memory_space<smem>>
      %c5 = arith.constant 5 : index
      %82 = memref.load %arg8[%c5] : memref<6xf32, #tpu.memory_space<smem>>
      %83 = vector.extract_strided_slice %74 {offsets = [0, 0], sizes = [8, 1], strides = [1, 1]} : vector<8x8xf32> to vector<8x1xf32>
      %84 = vector.extract_strided_slice %76 {offsets = [0, 0], sizes = [1, 8], strides = [1, 1]} : vector<4x8xf32> to vector<1x8xf32>
      %85 = vector.broadcast %83 : vector<8x1xf32> to vector<8x8xf32>
      %86 = vector.broadcast %84 : vector<1x8xf32> to vector<8x8xf32>
      %87 = arith.addf %85, %86 : vector<8x8xf32>
      %c0_55 = arith.constant 0 : index
      %88 = memref.load %arg8[%c0_55] : memref<6xf32, #tpu.memory_space<smem>>
      %89 = vector.broadcast %88 : f32 to vector<8x8xf32>
      %90 = arith.addf %87, %89 : vector<8x8xf32>
      %91 = vector.extract_strided_slice %74 {offsets = [0, 2], sizes = [8, 1], strides = [1, 1]} : vector<8x8xf32> to vector<8x1xf32>
      %92 = vector.extract_strided_slice %76 {offsets = [2, 0], sizes = [1, 8], strides = [1, 1]} : vector<4x8xf32> to vector<1x8xf32>
      %93 = vector.broadcast %91 : vector<8x1xf32> to vector<8x8xf32>
      %94 = vector.broadcast %92 : vector<1x8xf32> to vector<8x8xf32>
      %95 = arith.addf %93, %94 : vector<8x8xf32>
      %c2 = arith.constant 2 : index
      %96 = memref.load %arg8[%c2] : memref<6xf32, #tpu.memory_space<smem>>
      %97 = vector.broadcast %96 : f32 to vector<8x8xf32>
      %98 = arith.addf %95, %97 : vector<8x8xf32>
      %cst_56 = arith.constant 0.000000e+00 : f32
      %99 = vector.broadcast %cst_56 : f32 to vector<8x8xf32>
      %100 = arith.cmpf ogt, %90, %99 : vector<8x8xf32>
      %101 = vector.broadcast %81 : f32 to vector<8x8xf32>
      %102 = arith.mulf %101, %90 : vector<8x8xf32>
      %103 = arith.select %100, %90, %102 : vector<8x8xi1>, vector<8x8xf32>
      %cst_57 = arith.constant 0.000000e+00 : f32
      %104 = vector.broadcast %cst_57 : f32 to vector<8x8xf32>
      %105 = arith.cmpf ogt, %98, %104 : vector<8x8xf32>
      %106 = vector.broadcast %82 : f32 to vector<8x8xf32>
      %107 = arith.mulf %106, %98 : vector<8x8xf32>
      %108 = arith.select %105, %98, %107 : vector<8x8xi1>, vector<8x8xf32>
      %cst_58 = arith.constant -1.000000e+09 : f32
      %109 = vector.broadcast %cst_58 : f32 to vector<8x8xf32>
      %110 = arith.select %80, %103, %109 : vector<8x8xi1>, vector<8x8xf32>
      %cst_59 = arith.constant -1.000000e+09 : f32
      %111 = vector.broadcast %cst_59 : f32 to vector<8x8xf32>
      %112 = arith.select %80, %108, %111 : vector<8x8xi1>, vector<8x8xf32>
      %113 = arith.mulf %110, %110 : vector<8x8xf32>
      %114 = arith.mulf %112, %112 : vector<8x8xf32>
      %115 = arith.addf %113, %114 : vector<8x8xf32>
      %cst_60 = arith.constant dense<0xFF800000> : vector<8xf32>
      %116 = vector.multi_reduction <maximumf>, %115, %cst_60 [1] : vector<8x8xf32> to vector<8xf32>
      %117 = vector.shape_cast %116 : vector<8xf32> to vector<8x1xf32>
      %118 = vector.broadcast %117 : vector<8x1xf32> to vector<8x8xf32>
      %119 = arith.subf %115, %118 : vector<8x8xf32>
      %120 = math.exp %119 : vector<8x8xf32>
      %cst_61 = arith.constant dense<0.000000e+00> : vector<8xf32>
      %121 = vector.multi_reduction <add>, %120, %cst_61 [1] : vector<8x8xf32> to vector<8xf32>
      %122 = vector.shape_cast %121 : vector<8xf32> to vector<8x1xf32>
      %123 = tpu.reciprocal %122 {approx = true} : vector<8x1xf32> -> vector<8x1xf32>
      %124 = vector.broadcast %123 : vector<8x1xf32> to vector<8x8xf32>
      %125 = arith.mulf %120, %124 : vector<8x8xf32>
      %c0_62 = arith.constant 0 : index
      %c0_63 = arith.constant 0 : index
      %c0_64 = arith.constant 0 : index
      %126 = vector.load %arg15[%c0_62, %c0_63, %c0_64] : memref<2x8x8xf32, #tpu.memory_space<vmem>>, vector<1x8x8xf32>
      %127 = vector.shape_cast %126 : vector<1x8x8xf32> to vector<8x8xf32>
      %128 = vector.shape_cast %125 : vector<8x8xf32> to vector<1x8x8xf32>
      tpu.vector_store %arg15[%c0_62, %c0_63, %c0_64], %128 {strides = array<i32>} : memref<2x8x8xf32, #tpu.memory_space<vmem>>, vector<1x8x8xf32>,
      %129 = vector.extract_strided_slice %74 {offsets = [0, 1], sizes = [8, 1], strides = [1, 1]} : vector<8x8xf32> to vector<8x1xf32>
      %130 = vector.extract_strided_slice %76 {offsets = [1, 0], sizes = [1, 8], strides = [1, 1]} : vector<4x8xf32> to vector<1x8xf32>
      %131 = vector.broadcast %129 : vector<8x1xf32> to vector<8x8xf32>
      %132 = vector.broadcast %130 : vector<1x8xf32> to vector<8x8xf32>
      %133 = arith.addf %131, %132 : vector<8x8xf32>
      %c1_65 = arith.constant 1 : index
      %134 = memref.load %arg8[%c1_65] : memref<6xf32, #tpu.memory_space<smem>>
      %135 = vector.broadcast %134 : f32 to vector<8x8xf32>
      %136 = arith.addf %133, %135 : vector<8x8xf32>
      %137 = vector.extract_strided_slice %74 {offsets = [0, 3], sizes = [8, 1], strides = [1, 1]} : vector<8x8xf32> to vector<8x1xf32>
      %138 = vector.extract_strided_slice %76 {offsets = [3, 0], sizes = [1, 8], strides = [1, 1]} : vector<4x8xf32> to vector<1x8xf32>
      %139 = vector.broadcast %137 : vector<8x1xf32> to vector<8x8xf32>
      %140 = vector.broadcast %138 : vector<1x8xf32> to vector<8x8xf32>
      %141 = arith.addf %139, %140 : vector<8x8xf32>
      %c3 = arith.constant 3 : index
      %142 = memref.load %arg8[%c3] : memref<6xf32, #tpu.memory_space<smem>>
      %143 = vector.broadcast %142 : f32 to vector<8x8xf32>
      %144 = arith.addf %141, %143 : vector<8x8xf32>
      %cst_66 = arith.constant 0.000000e+00 : f32
      %145 = vector.broadcast %cst_66 : f32 to vector<8x8xf32>
      %146 = arith.cmpf ogt, %136, %145 : vector<8x8xf32>
      %147 = vector.broadcast %81 : f32 to vector<8x8xf32>
      %148 = arith.mulf %147, %136 : vector<8x8xf32>
      %149 = arith.select %146, %136, %148 : vector<8x8xi1>, vector<8x8xf32>
      %cst_67 = arith.constant 0.000000e+00 : f32
      %150 = vector.broadcast %cst_67 : f32 to vector<8x8xf32>
      %151 = arith.cmpf ogt, %144, %150 : vector<8x8xf32>
      %152 = vector.broadcast %82 : f32 to vector<8x8xf32>
      %153 = arith.mulf %152, %144 : vector<8x8xf32>
      %154 = arith.select %151, %144, %153 : vector<8x8xi1>, vector<8x8xf32>
      %cst_68 = arith.constant -1.000000e+09 : f32
      %155 = vector.broadcast %cst_68 : f32 to vector<8x8xf32>
      %156 = arith.select %80, %149, %155 : vector<8x8xi1>, vector<8x8xf32>
      %cst_69 = arith.constant -1.000000e+09 : f32
      %157 = vector.broadcast %cst_69 : f32 to vector<8x8xf32>
      %158 = arith.select %80, %154, %157 : vector<8x8xi1>, vector<8x8xf32>
      %159 = arith.mulf %156, %156 : vector<8x8xf32>
      %160 = arith.mulf %158, %158 : vector<8x8xf32>
      %161 = arith.addf %159, %160 : vector<8x8xf32>
      %cst_70 = arith.constant dense<0xFF800000> : vector<8xf32>
      %162 = vector.multi_reduction <maximumf>, %161, %cst_70 [1] : vector<8x8xf32> to vector<8xf32>
      %163 = vector.shape_cast %162 : vector<8xf32> to vector<8x1xf32>
      %164 = vector.broadcast %163 : vector<8x1xf32> to vector<8x8xf32>
      %165 = arith.subf %161, %164 : vector<8x8xf32>
      %166 = math.exp %165 : vector<8x8xf32>
      %cst_71 = arith.constant dense<0.000000e+00> : vector<8xf32>
      %167 = vector.multi_reduction <add>, %166, %cst_71 [1] : vector<8x8xf32> to vector<8xf32>
      %168 = vector.shape_cast %167 : vector<8xf32> to vector<8x1xf32>
      %169 = tpu.reciprocal %168 {approx = true} : vector<8x1xf32> -> vector<8x1xf32>
      %170 = vector.broadcast %169 : vector<8x1xf32> to vector<8x8xf32>
      %171 = arith.mulf %166, %170 : vector<8x8xf32>
      %c1_72 = arith.constant 1 : index
      %c0_73 = arith.constant 0 : index
      %c0_74 = arith.constant 0 : index
      %172 = vector.load %arg15[%c1_72, %c0_73, %c0_74] : memref<2x8x8xf32, #tpu.memory_space<vmem>>, vector<1x8x8xf32>
      %173 = vector.shape_cast %172 : vector<1x8x8xf32> to vector<8x8xf32>
      %174 = vector.shape_cast %171 : vector<8x8xf32> to vector<1x8x8xf32>
      tpu.vector_store %arg15[%c1_72, %c0_73, %c0_74], %174 {strides = array<i32>} : memref<2x8x8xf32, #tpu.memory_space<vmem>>, vector<1x8x8xf32>,
      %cst_75 = arith.constant 0.000000e+00 : f32
      %175 = vector.broadcast %cst_75 : f32 to vector<8x8xf32>
      %c0_76 = arith.constant 0 : index
      %c0_77 = arith.constant 0 : index
      %176 = vector.load %arg16[%c0_76, %c0_77] : memref<8x8xf32, #tpu.memory_space<vmem>>, vector<8x8xf32>
      tpu.vector_store %arg16[%c0_76, %c0_77], %175 {strides = array<i32>} : memref<8x8xf32, #tpu.memory_space<vmem>>, vector<8x8xf32>,
      %cst_78 = arith.constant 0.000000e+00 : f32
      %177 = vector.broadcast %cst_78 : f32 to vector<8x8xf32>
      %c0_79 = arith.constant 0 : index
      %c0_80 = arith.constant 0 : index
      %178 = vector.load %arg17[%c0_79, %c0_80] : memref<8x8xf32, #tpu.memory_space<vmem>>, vector<8x8xf32>
      tpu.vector_store %arg17[%c0_79, %c0_80], %177 {strides = array<i32>} : memref<8x8xf32, #tpu.memory_space<vmem>>, vector<8x8xf32>,
    } else {
    }
    %c0_6 = arith.constant 0 : index
    %c0_7 = arith.constant 0 : index
    %c0_8 = arith.constant 0 : index
    %c0_9 = arith.constant 0 : index
    %7 = vector.load %arg2[%c0_6, %c0_7, %c0_8, %c0_9] : memref<1x1x8x8xf32, #tpu.memory_space<vmem>>, vector<1x1x8x8xf32>
    %8 = vector.shape_cast %7 : vector<1x1x8x8xf32> to vector<8x8xf32>
    %c0_10 = arith.constant 0 : index
    %c0_11 = arith.constant 0 : index
    %c0_12 = arith.constant 0 : index
    %c0_13 = arith.constant 0 : index
    %9 = vector.load %arg3[%c0_10, %c0_11, %c0_12, %c0_13] : memref<1x1x8x8xf32, #tpu.memory_space<vmem>>, vector<1x1x8x8xf32>
    %10 = vector.shape_cast %9 : vector<1x1x8x8xf32> to vector<8x8xf32>
    %11 = arith.truncf %1 : vector<8x4xf32> to vector<8x4xbf16>
    %12 = arith.truncf %3 : vector<8x4xf32> to vector<8x4xbf16>
    %13 = arith.addf %1, %3 : vector<8x4xf32>
    %14 = arith.truncf %13 : vector<8x4xf32> to vector<8x4xbf16>
    %c0_14 = arith.constant 0 : index
    %c0_15 = arith.constant 0 : index
    %c0_16 = arith.constant 0 : index
    %15 = vector.load %arg15[%c0_14, %c0_15, %c0_16] : memref<2x8x8xf32, #tpu.memory_space<vmem>>, vector<1x8x8xf32>
    %16 = vector.shape_cast %15 : vector<1x8x8xf32> to vector<8x8xf32>
    %17 = arith.mulf %8, %16 : vector<8x8xf32>
    %18 = arith.mulf %10, %16 : vector<8x8xf32>
    %19 = arith.addf %17, %18 : vector<8x8xf32>
    %20 = arith.truncf %17 : vector<8x8xf32> to vector<8x8xbf16>
    %cst = arith.constant dense<0.000000e+00> : vector<8x4xf32>
    %21 = tpu.matmul %20, %11, %cst {dimension_numbers = #tpu.dot_dimension_numbers<[1], [0], [0], [1], [0, 0, 1, 1], [], []>} : vector<8x8xbf16>, vector<8x4xbf16>, vector<8x4xf32> -> vector<8x4xf32>
    %22 = arith.truncf %18 : vector<8x8xf32> to vector<8x8xbf16>
    %cst_17 = arith.constant dense<0.000000e+00> : vector<8x4xf32>
    %23 = tpu.matmul %22, %12, %cst_17 {dimension_numbers = #tpu.dot_dimension_numbers<[1], [0], [0], [1], [0, 0, 1, 1], [], []>} : vector<8x8xbf16>, vector<8x4xbf16>, vector<8x4xf32> -> vector<8x4xf32>
    %24 = arith.truncf %19 : vector<8x8xf32> to vector<8x8xbf16>
    %cst_18 = arith.constant dense<0.000000e+00> : vector<8x4xf32>
    %25 = tpu.matmul %24, %14, %cst_18 {dimension_numbers = #tpu.dot_dimension_numbers<[1], [0], [0], [1], [0, 0, 1, 1], [], []>} : vector<8x8xbf16>, vector<8x4xbf16>, vector<8x4xf32> -> vector<8x4xf32>
    %26 = arith.subf %21, %23 : vector<8x4xf32>
    %27 = arith.subf %25, %21 : vector<8x4xf32>
    %28 = arith.subf %27, %23 : vector<8x4xf32>
    %c1 = arith.constant 1 : index
    %c0_19 = arith.constant 0 : index
    %c0_20 = arith.constant 0 : index
    %29 = vector.load %arg15[%c1, %c0_19, %c0_20] : memref<2x8x8xf32, #tpu.memory_space<vmem>>, vector<1x8x8xf32>
    %30 = vector.shape_cast %29 : vector<1x8x8xf32> to vector<8x8xf32>
    %31 = arith.mulf %8, %30 : vector<8x8xf32>
    %32 = arith.mulf %10, %30 : vector<8x8xf32>
    %33 = arith.addf %31, %32 : vector<8x8xf32>
    %34 = arith.truncf %31 : vector<8x8xf32> to vector<8x8xbf16>
    %cst_21 = arith.constant dense<0.000000e+00> : vector<8x4xf32>
    %35 = tpu.matmul %34, %11, %cst_21 {dimension_numbers = #tpu.dot_dimension_numbers<[1], [0], [0], [1], [0, 0, 1, 1], [], []>} : vector<8x8xbf16>, vector<8x4xbf16>, vector<8x4xf32> -> vector<8x4xf32>
    %36 = arith.truncf %32 : vector<8x8xf32> to vector<8x8xbf16>
    %cst_22 = arith.constant dense<0.000000e+00> : vector<8x4xf32>
    %37 = tpu.matmul %36, %12, %cst_22 {dimension_numbers = #tpu.dot_dimension_numbers<[1], [0], [0], [1], [0, 0, 1, 1], [], []>} : vector<8x8xbf16>, vector<8x4xbf16>, vector<8x4xf32> -> vector<8x4xf32>
    %38 = arith.truncf %33 : vector<8x8xf32> to vector<8x8xbf16>
    %cst_23 = arith.constant dense<0.000000e+00> : vector<8x4xf32>
    %39 = tpu.matmul %38, %14, %cst_23 {dimension_numbers = #tpu.dot_dimension_numbers<[1], [0], [0], [1], [0, 0, 1, 1], [], []>} : vector<8x8xbf16>, vector<8x4xbf16>, vector<8x4xf32> -> vector<8x4xf32>
    %40 = arith.subf %35, %37 : vector<8x4xf32>
    %41 = arith.subf %39, %35 : vector<8x4xf32>
    %42 = arith.subf %41, %37 : vector<8x4xf32>
    %43 = tpu.concatenate %26, %40 in 1 : vector<8x4xf32>, vector<8x4xf32> -> vector<8x8xf32>
    %44 = tpu.concatenate %28, %42 in 1 : vector<8x4xf32>, vector<8x4xf32> -> vector<8x8xf32>
    %45 = arith.addf %43, %44 : vector<8x8xf32>
    %46 = arith.truncf %43 : vector<8x8xf32> to vector<8x8xbf16>
    %c0_24 = arith.constant 0 : index
    %c0_25 = arith.constant 0 : index
    %c0_26 = arith.constant 0 : index
    %47 = vector.load %arg9[%c0_24, %c0_25, %c0_26] : memref<1x8x8xbf16, #tpu.memory_space<vmem>>, vector<1x8x8xbf16>
    %48 = vector.shape_cast %47 : vector<1x8x8xbf16> to vector<8x8xbf16>
    %cst_27 = arith.constant dense<0.000000e+00> : vector<8x8xf32>
    %49 = tpu.matmul %46, %48, %cst_27 {dimension_numbers = #tpu.dot_dimension_numbers<[1], [0], [0], [1], [0, 0, 1, 1], [], []>} : vector<8x8xbf16>, vector<8x8xbf16>, vector<8x8xf32> -> vector<8x8xf32>
    %50 = arith.truncf %44 : vector<8x8xf32> to vector<8x8xbf16>
    %c0_28 = arith.constant 0 : index
    %c0_29 = arith.constant 0 : index
    %c0_30 = arith.constant 0 : index
    %51 = vector.load %arg10[%c0_28, %c0_29, %c0_30] : memref<1x8x8xbf16, #tpu.memory_space<vmem>>, vector<1x8x8xbf16>
    %52 = vector.shape_cast %51 : vector<1x8x8xbf16> to vector<8x8xbf16>
    %cst_31 = arith.constant dense<0.000000e+00> : vector<8x8xf32>
    %53 = tpu.matmul %50, %52, %cst_31 {dimension_numbers = #tpu.dot_dimension_numbers<[1], [0], [0], [1], [0, 0, 1, 1], [], []>} : vector<8x8xbf16>, vector<8x8xbf16>, vector<8x8xf32> -> vector<8x8xf32>
    %54 = arith.truncf %45 : vector<8x8xf32> to vector<8x8xbf16>
    %c0_32 = arith.constant 0 : index
    %c0_33 = arith.constant 0 : index
    %c0_34 = arith.constant 0 : index
    %55 = vector.load %arg11[%c0_32, %c0_33, %c0_34] : memref<1x8x8xbf16, #tpu.memory_space<vmem>>, vector<1x8x8xbf16>
    %56 = vector.shape_cast %55 : vector<1x8x8xbf16> to vector<8x8xbf16>
    %cst_35 = arith.constant dense<0.000000e+00> : vector<8x8xf32>
    %57 = tpu.matmul %54, %56, %cst_35 {dimension_numbers = #tpu.dot_dimension_numbers<[1], [0], [0], [1], [0, 0, 1, 1], [], []>} : vector<8x8xbf16>, vector<8x8xbf16>, vector<8x8xf32> -> vector<8x8xf32>
    %c0_36 = arith.constant 0 : index
    %c0_37 = arith.constant 0 : index
    %58 = vector.load %arg16[%c0_36, %c0_37] : memref<8x8xf32, #tpu.memory_space<vmem>>, vector<8x8xf32>
    %59 = arith.subf %49, %53 : vector<8x8xf32>
    %60 = arith.addf %58, %59 : vector<8x8xf32>
    %c0_38 = arith.constant 0 : index
    %c0_39 = arith.constant 0 : index
    %61 = vector.load %arg16[%c0_38, %c0_39] : memref<8x8xf32, #tpu.memory_space<vmem>>, vector<8x8xf32>
    tpu.vector_store %arg16[%c0_38, %c0_39], %60 {strides = array<i32>} : memref<8x8xf32, #tpu.memory_space<vmem>>, vector<8x8xf32>,
    %c0_40 = arith.constant 0 : index
    %c0_41 = arith.constant 0 : index
    %62 = vector.load %arg17[%c0_40, %c0_41] : memref<8x8xf32, #tpu.memory_space<vmem>>, vector<8x8xf32>
    %63 = arith.subf %57, %49 : vector<8x8xf32>
    %64 = arith.subf %63, %53 : vector<8x8xf32>
    %65 = arith.addf %62, %64 : vector<8x8xf32>
    %c0_42 = arith.constant 0 : index
    %c0_43 = arith.constant 0 : index
    %66 = vector.load %arg17[%c0_42, %c0_43] : memref<8x8xf32, #tpu.memory_space<vmem>>, vector<8x8xf32>
    tpu.vector_store %arg17[%c0_42, %c0_43], %65 {strides = array<i32>} : memref<8x8xf32, #tpu.memory_space<vmem>>, vector<8x8xf32>,
    %c2_i32 = arith.constant 2 : i32
    %67 = arith.cmpi eq, %arg1, %c2_i32 : i32
    %68 = arith.extui %67 : i1 to i32
    %c0_i32_44 = arith.constant 0 : i32
    %69 = arith.cmpi ne, %68, %c0_i32_44 : i32
    scf.if %69 {
      %c0_45 = arith.constant 0 : index
      %c0_46 = arith.constant 0 : index
      %70 = vector.load %arg16[%c0_45, %c0_46] : memref<8x8xf32, #tpu.memory_space<vmem>>, vector<8x8xf32>
      %c0_47 = arith.constant 0 : index
      %c0_48 = arith.constant 0 : index
      %71 = vector.load %arg12[%c0_47, %c0_48] : memref<2x8xf32, #tpu.memory_space<vmem>>, vector<1x8xf32>
      %72 = vector.broadcast %71 : vector<1x8xf32> to vector<8x8xf32>
      %73 = arith.addf %70, %72 : vector<8x8xf32>
      %c0_49 = arith.constant 0 : index
      %c0_50 = arith.constant 0 : index
      %c0_51 = arith.constant 0 : index
      %74 = vector.load %arg13[%c0_49, %c0_50, %c0_51] : memref<1x8x8xf32, #tpu.memory_space<vmem>>, vector<1x8x8xf32>
      %75 = vector.shape_cast %74 : vector<1x8x8xf32> to vector<8x8xf32>
      %76 = vector.shape_cast %73 : vector<8x8xf32> to vector<1x8x8xf32>
      tpu.vector_store %arg13[%c0_49, %c0_50, %c0_51], %76 {strides = array<i32>} : memref<1x8x8xf32, #tpu.memory_space<vmem>>, vector<1x8x8xf32>,
      %c0_52 = arith.constant 0 : index
      %c0_53 = arith.constant 0 : index
      %77 = vector.load %arg17[%c0_52, %c0_53] : memref<8x8xf32, #tpu.memory_space<vmem>>, vector<8x8xf32>
      %c1_54 = arith.constant 1 : index
      %c0_55 = arith.constant 0 : index
      %78 = vector.load %arg12[%c1_54, %c0_55] : memref<2x8xf32, #tpu.memory_space<vmem>>, vector<1x8xf32>
      %79 = vector.broadcast %78 : vector<1x8xf32> to vector<8x8xf32>
      %80 = arith.addf %77, %79 : vector<8x8xf32>
      %c0_56 = arith.constant 0 : index
      %c0_57 = arith.constant 0 : index
      %c0_58 = arith.constant 0 : index
      %81 = vector.load %arg14[%c0_56, %c0_57, %c0_58] : memref<1x8x8xf32, #tpu.memory_space<vmem>>, vector<1x8x8xf32>
      %82 = vector.shape_cast %81 : vector<1x8x8xf32> to vector<8x8xf32>
      %83 = vector.shape_cast %80 : vector<8x8xf32> to vector<1x8x8xf32>
      tpu.vector_store %arg14[%c0_56, %c0_57, %c0_58], %83 {strides = array<i32>} : memref<1x8x8xf32, #tpu.memory_space<vmem>>, vector<1x8x8xf32>,
    } else {
    }
    return
  }
  func.func @transform_0(%arg0: i32, %arg1: i32) -> (i32, i32, i32, i32) {
    %c0_i32 = arith.constant 0 : i32
    %c0_i32_0 = arith.constant 0 : i32
    %c0_i32_1 = arith.constant 0 : i32
    return %arg0, %arg1, %c0_i32, %c0_i32_0 : i32, i32, i32, i32
  }
  func.func @transform_1(%arg0: i32, %arg1: i32) -> (i32, i32, i32, i32) {
    %c0_i32 = arith.constant 0 : i32
    %c0_i32_0 = arith.constant 0 : i32
    %c0_i32_1 = arith.constant 0 : i32
    return %arg0, %arg1, %c0_i32, %c0_i32_0 : i32, i32, i32, i32
  }
  func.func @transform_2(%arg0: i32, %arg1: i32) -> (i32, i32, i32) {
    %c0_i32 = arith.constant 0 : i32
    %c0_i32_0 = arith.constant 0 : i32
    %c0_i32_1 = arith.constant 0 : i32
    return %arg0, %c0_i32, %c0_i32_0 : i32, i32, i32
  }
  func.func @transform_3(%arg0: i32, %arg1: i32) -> (i32, i32, i32) {
    %c0_i32 = arith.constant 0 : i32
    %c0_i32_0 = arith.constant 0 : i32
    %c0_i32_1 = arith.constant 0 : i32
    return %arg0, %c0_i32, %c0_i32_0 : i32, i32, i32
  }
  func.func @transform_4(%arg0: i32, %arg1: i32) -> (i32, i32, i32) {
    %c0_i32 = arith.constant 0 : i32
    %c0_i32_0 = arith.constant 0 : i32
    %c0_i32_1 = arith.constant 0 : i32
    return %arg0, %c0_i32, %c0_i32_0 : i32, i32, i32
  }
  func.func @transform_5(%arg0: i32, %arg1: i32) -> (i32, i32) {
    %c0_i32 = arith.constant 0 : i32
    %c0_i32_0 = arith.constant 0 : i32
    %c0_i32_1 = arith.constant 0 : i32
    return %c0_i32, %c0_i32_0 : i32, i32
  }
  func.func @transform_6(%arg0: i32, %arg1: i32) -> i32 {
    %c0_i32 = arith.constant 0 : i32
    %c0_i32_0 = arith.constant 0 : i32
    return %c0_i32 : i32
  }
  func.func @transform_7(%arg0: i32, %arg1: i32) -> (i32, i32, i32) {
    %c0_i32 = arith.constant 0 : i32
    %c0_i32_0 = arith.constant 0 : i32
    %c0_i32_1 = arith.constant 0 : i32
    return %arg1, %c0_i32, %c0_i32_0 : i32, i32, i32
  }
  func.func @transform_8(%arg0: i32, %arg1: i32) -> (i32, i32, i32) {
    %c0_i32 = arith.constant 0 : i32
    %c0_i32_0 = arith.constant 0 : i32
    %c0_i32_1 = arith.constant 0 : i32
    return %arg1, %c0_i32, %c0_i32_0 : i32, i32, i32
  }
  func.func @transform_9(%arg0: i32, %arg1: i32) -> (i32, i32, i32) {
    %c0_i32 = arith.constant 0 : i32
    %c0_i32_0 = arith.constant 0 : i32
    %c0_i32_1 = arith.constant 0 : i32
    return %arg1, %c0_i32, %c0_i32_0 : i32, i32, i32
  }
  func.func @transform_10(%arg0: i32, %arg1: i32) -> (i32, i32) {
    %c0_i32 = arith.constant 0 : i32
    %c0_i32_0 = arith.constant 0 : i32
    %c0_i32_1 = arith.constant 0 : i32
    return %c0_i32, %c0_i32_0 : i32, i32
  }
  func.func @transform_11(%arg0: i32, %arg1: i32) -> (i32, i32, i32) {
    %c0_i32 = arith.constant 0 : i32
    %c0_i32_0 = arith.constant 0 : i32
    %c0_i32_1 = arith.constant 0 : i32
    return %arg0, %c0_i32, %c0_i32_0 : i32, i32, i32
  }
  func.func @transform_12(%arg0: i32, %arg1: i32) -> (i32, i32, i32) {
    %c0_i32 = arith.constant 0 : i32
    %c0_i32_0 = arith.constant 0 : i32
    %c0_i32_1 = arith.constant 0 : i32
    return %arg0, %c0_i32, %c0_i32_0 : i32, i32, i32
  }
}

module attributes {stable_mosaic.version = 11 : i64} {
  func.func @_cheb_conv_kernel(%arg0: i32, %arg1: i32, %arg2: memref<1x1x8x8xf32, #tpu.memory_space<vmem>>, %arg3: memref<1x1x8x8xf32, #tpu.memory_space<vmem>>, %arg4: memref<1x8x8xf32, #tpu.memory_space<vmem>>, %arg5: memref<1x8x8xf32, #tpu.memory_space<vmem>>, %arg6: memref<1x8x8xf32, #tpu.memory_space<vmem>>, %arg7: memref<16x8xf32, #tpu.memory_space<vmem>>, %arg8: memref<6xf32, #tpu.memory_space<smem>>, %arg9: memref<1x16x8xbf16, #tpu.memory_space<vmem>>, %arg10: memref<1x16x8xbf16, #tpu.memory_space<vmem>>, %arg11: memref<1x16x8xbf16, #tpu.memory_space<vmem>>, %arg12: memref<2x8xf32, #tpu.memory_space<vmem>>, %arg13: memref<1x8x8xf32, #tpu.memory_space<vmem>>, %arg14: memref<1x8x8xf32, #tpu.memory_space<vmem>>, %arg15: memref<2x8x8xf32, #tpu.memory_space<vmem>>, %arg16: memref<8x8xf32, #tpu.memory_space<vmem>>, %arg17: memref<8x8xf32, #tpu.memory_space<vmem>>) attributes {dimension_semantics = [#tpu.dimension_semantics<parallel>, #tpu.dimension_semantics<arbitrary>], iteration_bounds = array<i64: 2, 3>, scalar_prefetch = 0 : i64, scratch_operands = 3 : i64, tpu.core_type = #tpu.core_type<tc>, window_params = [{transform_indices = @transform_0, window_bounds = array<i64: 1, 1, 8, 8>}, {transform_indices = @transform_1, window_bounds = array<i64: 1, 1, 8, 8>}, {transform_indices = @transform_2, window_bounds = array<i64: 1, 8, 8>}, {transform_indices = @transform_3, window_bounds = array<i64: 1, 8, 8>}, {transform_indices = @transform_4, window_bounds = array<i64: 1, 8, 8>}, {pipeline_mode = #tpu.pipeline_mode<synchronous>, transform_indices = @transform_5, window_bounds = array<i64: 16, 8>}, {transform_indices = @transform_6, window_bounds = array<i64: 6>}, {transform_indices = @transform_7, window_bounds = array<i64: 1, 16, 8>}, {transform_indices = @transform_8, window_bounds = array<i64: 1, 16, 8>}, {transform_indices = @transform_9, window_bounds = array<i64: 1, 16, 8>}, {pipeline_mode = #tpu.pipeline_mode<synchronous>, transform_indices = @transform_10, window_bounds = array<i64: 2, 8>}, {transform_indices = @transform_11, window_bounds = array<i64: 1, 8, 8>}, {transform_indices = @transform_12, window_bounds = array<i64: 1, 8, 8>}]} {
    %c0 = arith.constant 0 : index
    %c0_0 = arith.constant 0 : index
    %c0_1 = arith.constant 0 : index
    %0 = vector.load %arg5[%c0, %c0_0, %c0_1] : memref<1x8x8xf32, #tpu.memory_space<vmem>>, vector<1x8x8xf32>
    %1 = vector.shape_cast %0 : vector<1x8x8xf32> to vector<8x8xf32>
    %c0_2 = arith.constant 0 : index
    %c0_3 = arith.constant 0 : index
    %c0_4 = arith.constant 0 : index
    %2 = vector.load %arg6[%c0_2, %c0_3, %c0_4] : memref<1x8x8xf32, #tpu.memory_space<vmem>>, vector<1x8x8xf32>
    %3 = vector.shape_cast %2 : vector<1x8x8xf32> to vector<8x8xf32>
    %c0_i32 = arith.constant 0 : i32
    %4 = arith.cmpi eq, %arg1, %c0_i32 : i32
    %5 = arith.extui %4 : i1 to i32
    %c0_i32_5 = arith.constant 0 : i32
    %6 = arith.cmpi ne, %5, %c0_i32_5 : i32
    scf.if %6 {
      %c0_45 = arith.constant 0 : index
      %c0_46 = arith.constant 0 : index
      %70 = vector.load %arg7[%c0_45, %c0_46] : memref<16x8xf32, #tpu.memory_space<vmem>>, vector<8x8xf32>
      %cst_47 = arith.constant dense<0.000000e+00> : vector<8x8xf32>
      %71 = tpu.matmul %1, %70, %cst_47 {dimension_numbers = #tpu.dot_dimension_numbers<[1], [0], [0], [1], [0, 0, 1, 1], [], []>} : vector<8x8xf32>, vector<8x8xf32>, vector<8x8xf32> -> vector<8x8xf32>
      %c8 = arith.constant 8 : index
      %c0_48 = arith.constant 0 : index
      %72 = vector.load %arg7[%c8, %c0_48] : memref<16x8xf32, #tpu.memory_space<vmem>>, vector<8x8xf32>
      %cst_49 = arith.constant dense<0.000000e+00> : vector<8x8xf32>
      %73 = tpu.matmul %3, %72, %cst_49 {dimension_numbers = #tpu.dot_dimension_numbers<[1], [0], [0], [1], [0, 0, 1, 1], [], []>} : vector<8x8xf32>, vector<8x8xf32>, vector<8x8xf32> -> vector<8x8xf32>
      %74 = arith.addf %71, %73 : vector<8x8xf32>
      %75 = vector.extract_strided_slice %74 {offsets = [0, 4], sizes = [8, 4], strides = [1, 1]} : vector<8x8xf32> to vector<8x4xf32>
      %76 = tpu.transpose %75, [1, 0] : vector<8x4xf32> -> vector<4x8xf32>
      %c0_50 = arith.constant 0 : index
      %c0_51 = arith.constant 0 : index
      %c0_52 = arith.constant 0 : index
      %77 = vector.load %arg4[%c0_50, %c0_51, %c0_52] : memref<1x8x8xf32, #tpu.memory_space<vmem>>, vector<1x8x8xf32>
      %78 = vector.shape_cast %77 : vector<1x8x8xf32> to vector<8x8xf32>
      %cst_53 = arith.constant 5.000000e-01 : f32
      %79 = vector.broadcast %cst_53 : f32 to vector<8x8xf32>
      %80 = arith.cmpf ogt, %78, %79 : vector<8x8xf32>
      %c4 = arith.constant 4 : index
      %81 = memref.load %arg8[%c4] : memref<6xf32, #tpu.memory_space<smem>>
      %c5 = arith.constant 5 : index
      %82 = memref.load %arg8[%c5] : memref<6xf32, #tpu.memory_space<smem>>
      %83 = vector.extract_strided_slice %74 {offsets = [0, 0], sizes = [8, 1], strides = [1, 1]} : vector<8x8xf32> to vector<8x1xf32>
      %84 = vector.extract_strided_slice %76 {offsets = [0, 0], sizes = [1, 8], strides = [1, 1]} : vector<4x8xf32> to vector<1x8xf32>
      %85 = vector.broadcast %83 : vector<8x1xf32> to vector<8x8xf32>
      %86 = vector.broadcast %84 : vector<1x8xf32> to vector<8x8xf32>
      %87 = arith.addf %85, %86 : vector<8x8xf32>
      %c0_54 = arith.constant 0 : index
      %88 = memref.load %arg8[%c0_54] : memref<6xf32, #tpu.memory_space<smem>>
      %89 = vector.broadcast %88 : f32 to vector<8x8xf32>
      %90 = arith.addf %87, %89 : vector<8x8xf32>
      %91 = vector.extract_strided_slice %74 {offsets = [0, 2], sizes = [8, 1], strides = [1, 1]} : vector<8x8xf32> to vector<8x1xf32>
      %92 = vector.extract_strided_slice %76 {offsets = [2, 0], sizes = [1, 8], strides = [1, 1]} : vector<4x8xf32> to vector<1x8xf32>
      %93 = vector.broadcast %91 : vector<8x1xf32> to vector<8x8xf32>
      %94 = vector.broadcast %92 : vector<1x8xf32> to vector<8x8xf32>
      %95 = arith.addf %93, %94 : vector<8x8xf32>
      %c2 = arith.constant 2 : index
      %96 = memref.load %arg8[%c2] : memref<6xf32, #tpu.memory_space<smem>>
      %97 = vector.broadcast %96 : f32 to vector<8x8xf32>
      %98 = arith.addf %95, %97 : vector<8x8xf32>
      %cst_55 = arith.constant 0.000000e+00 : f32
      %99 = vector.broadcast %cst_55 : f32 to vector<8x8xf32>
      %100 = arith.cmpf ogt, %90, %99 : vector<8x8xf32>
      %101 = vector.broadcast %81 : f32 to vector<8x8xf32>
      %102 = arith.mulf %101, %90 : vector<8x8xf32>
      %103 = arith.select %100, %90, %102 : vector<8x8xi1>, vector<8x8xf32>
      %cst_56 = arith.constant 0.000000e+00 : f32
      %104 = vector.broadcast %cst_56 : f32 to vector<8x8xf32>
      %105 = arith.cmpf ogt, %98, %104 : vector<8x8xf32>
      %106 = vector.broadcast %82 : f32 to vector<8x8xf32>
      %107 = arith.mulf %106, %98 : vector<8x8xf32>
      %108 = arith.select %105, %98, %107 : vector<8x8xi1>, vector<8x8xf32>
      %cst_57 = arith.constant -1.000000e+09 : f32
      %109 = vector.broadcast %cst_57 : f32 to vector<8x8xf32>
      %110 = arith.select %80, %103, %109 : vector<8x8xi1>, vector<8x8xf32>
      %cst_58 = arith.constant -1.000000e+09 : f32
      %111 = vector.broadcast %cst_58 : f32 to vector<8x8xf32>
      %112 = arith.select %80, %108, %111 : vector<8x8xi1>, vector<8x8xf32>
      %113 = arith.mulf %110, %110 : vector<8x8xf32>
      %114 = arith.mulf %112, %112 : vector<8x8xf32>
      %115 = arith.addf %113, %114 : vector<8x8xf32>
      %cst_59 = arith.constant dense<0xFF800000> : vector<8xf32>
      %116 = vector.multi_reduction <maximumf>, %115, %cst_59 [1] : vector<8x8xf32> to vector<8xf32>
      %117 = vector.shape_cast %116 : vector<8xf32> to vector<8x1xf32>
      %118 = vector.broadcast %117 : vector<8x1xf32> to vector<8x8xf32>
      %119 = arith.subf %115, %118 : vector<8x8xf32>
      %120 = math.exp %119 : vector<8x8xf32>
      %cst_60 = arith.constant dense<0.000000e+00> : vector<8xf32>
      %121 = vector.multi_reduction <add>, %120, %cst_60 [1] : vector<8x8xf32> to vector<8xf32>
      %122 = vector.shape_cast %121 : vector<8xf32> to vector<8x1xf32>
      %123 = tpu.reciprocal %122 {approx = true} : vector<8x1xf32> -> vector<8x1xf32>
      %124 = vector.broadcast %123 : vector<8x1xf32> to vector<8x8xf32>
      %125 = arith.mulf %120, %124 : vector<8x8xf32>
      %c0_61 = arith.constant 0 : index
      %c0_62 = arith.constant 0 : index
      %c0_63 = arith.constant 0 : index
      %126 = vector.load %arg15[%c0_61, %c0_62, %c0_63] : memref<2x8x8xf32, #tpu.memory_space<vmem>>, vector<1x8x8xf32>
      %127 = vector.shape_cast %126 : vector<1x8x8xf32> to vector<8x8xf32>
      %128 = vector.shape_cast %125 : vector<8x8xf32> to vector<1x8x8xf32>
      tpu.vector_store %arg15[%c0_61, %c0_62, %c0_63], %128 {strides = array<i32>} : memref<2x8x8xf32, #tpu.memory_space<vmem>>, vector<1x8x8xf32>,
      %129 = vector.extract_strided_slice %74 {offsets = [0, 1], sizes = [8, 1], strides = [1, 1]} : vector<8x8xf32> to vector<8x1xf32>
      %130 = vector.extract_strided_slice %76 {offsets = [1, 0], sizes = [1, 8], strides = [1, 1]} : vector<4x8xf32> to vector<1x8xf32>
      %131 = vector.broadcast %129 : vector<8x1xf32> to vector<8x8xf32>
      %132 = vector.broadcast %130 : vector<1x8xf32> to vector<8x8xf32>
      %133 = arith.addf %131, %132 : vector<8x8xf32>
      %c1_64 = arith.constant 1 : index
      %134 = memref.load %arg8[%c1_64] : memref<6xf32, #tpu.memory_space<smem>>
      %135 = vector.broadcast %134 : f32 to vector<8x8xf32>
      %136 = arith.addf %133, %135 : vector<8x8xf32>
      %137 = vector.extract_strided_slice %74 {offsets = [0, 3], sizes = [8, 1], strides = [1, 1]} : vector<8x8xf32> to vector<8x1xf32>
      %138 = vector.extract_strided_slice %76 {offsets = [3, 0], sizes = [1, 8], strides = [1, 1]} : vector<4x8xf32> to vector<1x8xf32>
      %139 = vector.broadcast %137 : vector<8x1xf32> to vector<8x8xf32>
      %140 = vector.broadcast %138 : vector<1x8xf32> to vector<8x8xf32>
      %141 = arith.addf %139, %140 : vector<8x8xf32>
      %c3 = arith.constant 3 : index
      %142 = memref.load %arg8[%c3] : memref<6xf32, #tpu.memory_space<smem>>
      %143 = vector.broadcast %142 : f32 to vector<8x8xf32>
      %144 = arith.addf %141, %143 : vector<8x8xf32>
      %cst_65 = arith.constant 0.000000e+00 : f32
      %145 = vector.broadcast %cst_65 : f32 to vector<8x8xf32>
      %146 = arith.cmpf ogt, %136, %145 : vector<8x8xf32>
      %147 = vector.broadcast %81 : f32 to vector<8x8xf32>
      %148 = arith.mulf %147, %136 : vector<8x8xf32>
      %149 = arith.select %146, %136, %148 : vector<8x8xi1>, vector<8x8xf32>
      %cst_66 = arith.constant 0.000000e+00 : f32
      %150 = vector.broadcast %cst_66 : f32 to vector<8x8xf32>
      %151 = arith.cmpf ogt, %144, %150 : vector<8x8xf32>
      %152 = vector.broadcast %82 : f32 to vector<8x8xf32>
      %153 = arith.mulf %152, %144 : vector<8x8xf32>
      %154 = arith.select %151, %144, %153 : vector<8x8xi1>, vector<8x8xf32>
      %cst_67 = arith.constant -1.000000e+09 : f32
      %155 = vector.broadcast %cst_67 : f32 to vector<8x8xf32>
      %156 = arith.select %80, %149, %155 : vector<8x8xi1>, vector<8x8xf32>
      %cst_68 = arith.constant -1.000000e+09 : f32
      %157 = vector.broadcast %cst_68 : f32 to vector<8x8xf32>
      %158 = arith.select %80, %154, %157 : vector<8x8xi1>, vector<8x8xf32>
      %159 = arith.mulf %156, %156 : vector<8x8xf32>
      %160 = arith.mulf %158, %158 : vector<8x8xf32>
      %161 = arith.addf %159, %160 : vector<8x8xf32>
      %cst_69 = arith.constant dense<0xFF800000> : vector<8xf32>
      %162 = vector.multi_reduction <maximumf>, %161, %cst_69 [1] : vector<8x8xf32> to vector<8xf32>
      %163 = vector.shape_cast %162 : vector<8xf32> to vector<8x1xf32>
      %164 = vector.broadcast %163 : vector<8x1xf32> to vector<8x8xf32>
      %165 = arith.subf %161, %164 : vector<8x8xf32>
      %166 = math.exp %165 : vector<8x8xf32>
      %cst_70 = arith.constant dense<0.000000e+00> : vector<8xf32>
      %167 = vector.multi_reduction <add>, %166, %cst_70 [1] : vector<8x8xf32> to vector<8xf32>
      %168 = vector.shape_cast %167 : vector<8xf32> to vector<8x1xf32>
      %169 = tpu.reciprocal %168 {approx = true} : vector<8x1xf32> -> vector<8x1xf32>
      %170 = vector.broadcast %169 : vector<8x1xf32> to vector<8x8xf32>
      %171 = arith.mulf %166, %170 : vector<8x8xf32>
      %c1_71 = arith.constant 1 : index
      %c0_72 = arith.constant 0 : index
      %c0_73 = arith.constant 0 : index
      %172 = vector.load %arg15[%c1_71, %c0_72, %c0_73] : memref<2x8x8xf32, #tpu.memory_space<vmem>>, vector<1x8x8xf32>
      %173 = vector.shape_cast %172 : vector<1x8x8xf32> to vector<8x8xf32>
      %174 = vector.shape_cast %171 : vector<8x8xf32> to vector<1x8x8xf32>
      tpu.vector_store %arg15[%c1_71, %c0_72, %c0_73], %174 {strides = array<i32>} : memref<2x8x8xf32, #tpu.memory_space<vmem>>, vector<1x8x8xf32>,
      %cst_74 = arith.constant 0.000000e+00 : f32
      %175 = vector.broadcast %cst_74 : f32 to vector<8x8xf32>
      %c0_75 = arith.constant 0 : index
      %c0_76 = arith.constant 0 : index
      %176 = vector.load %arg16[%c0_75, %c0_76] : memref<8x8xf32, #tpu.memory_space<vmem>>, vector<8x8xf32>
      tpu.vector_store %arg16[%c0_75, %c0_76], %175 {strides = array<i32>} : memref<8x8xf32, #tpu.memory_space<vmem>>, vector<8x8xf32>,
      %cst_77 = arith.constant 0.000000e+00 : f32
      %177 = vector.broadcast %cst_77 : f32 to vector<8x8xf32>
      %c0_78 = arith.constant 0 : index
      %c0_79 = arith.constant 0 : index
      %178 = vector.load %arg17[%c0_78, %c0_79] : memref<8x8xf32, #tpu.memory_space<vmem>>, vector<8x8xf32>
      tpu.vector_store %arg17[%c0_78, %c0_79], %177 {strides = array<i32>} : memref<8x8xf32, #tpu.memory_space<vmem>>, vector<8x8xf32>,
    } else {
    }
    %c0_6 = arith.constant 0 : index
    %c0_7 = arith.constant 0 : index
    %c0_8 = arith.constant 0 : index
    %c0_9 = arith.constant 0 : index
    %7 = vector.load %arg2[%c0_6, %c0_7, %c0_8, %c0_9] : memref<1x1x8x8xf32, #tpu.memory_space<vmem>>, vector<1x1x8x8xf32>
    %8 = vector.shape_cast %7 : vector<1x1x8x8xf32> to vector<8x8xf32>
    %c0_10 = arith.constant 0 : index
    %c0_11 = arith.constant 0 : index
    %c0_12 = arith.constant 0 : index
    %c0_13 = arith.constant 0 : index
    %9 = vector.load %arg3[%c0_10, %c0_11, %c0_12, %c0_13] : memref<1x1x8x8xf32, #tpu.memory_space<vmem>>, vector<1x1x8x8xf32>
    %10 = vector.shape_cast %9 : vector<1x1x8x8xf32> to vector<8x8xf32>
    %11 = arith.truncf %1 : vector<8x8xf32> to vector<8x8xbf16>
    %12 = arith.truncf %3 : vector<8x8xf32> to vector<8x8xbf16>
    %13 = arith.addf %1, %3 : vector<8x8xf32>
    %14 = arith.truncf %13 : vector<8x8xf32> to vector<8x8xbf16>
    %c0_14 = arith.constant 0 : index
    %c0_15 = arith.constant 0 : index
    %c0_16 = arith.constant 0 : index
    %15 = vector.load %arg15[%c0_14, %c0_15, %c0_16] : memref<2x8x8xf32, #tpu.memory_space<vmem>>, vector<1x8x8xf32>
    %16 = vector.shape_cast %15 : vector<1x8x8xf32> to vector<8x8xf32>
    %17 = arith.mulf %8, %16 : vector<8x8xf32>
    %18 = arith.mulf %10, %16 : vector<8x8xf32>
    %19 = arith.addf %17, %18 : vector<8x8xf32>
    %20 = arith.truncf %17 : vector<8x8xf32> to vector<8x8xbf16>
    %cst = arith.constant dense<0.000000e+00> : vector<8x8xf32>
    %21 = tpu.matmul %20, %11, %cst {dimension_numbers = #tpu.dot_dimension_numbers<[1], [0], [0], [1], [0, 0, 1, 1], [], []>} : vector<8x8xbf16>, vector<8x8xbf16>, vector<8x8xf32> -> vector<8x8xf32>
    %22 = arith.truncf %18 : vector<8x8xf32> to vector<8x8xbf16>
    %cst_17 = arith.constant dense<0.000000e+00> : vector<8x8xf32>
    %23 = tpu.matmul %22, %12, %cst_17 {dimension_numbers = #tpu.dot_dimension_numbers<[1], [0], [0], [1], [0, 0, 1, 1], [], []>} : vector<8x8xbf16>, vector<8x8xbf16>, vector<8x8xf32> -> vector<8x8xf32>
    %24 = arith.truncf %19 : vector<8x8xf32> to vector<8x8xbf16>
    %cst_18 = arith.constant dense<0.000000e+00> : vector<8x8xf32>
    %25 = tpu.matmul %24, %14, %cst_18 {dimension_numbers = #tpu.dot_dimension_numbers<[1], [0], [0], [1], [0, 0, 1, 1], [], []>} : vector<8x8xbf16>, vector<8x8xbf16>, vector<8x8xf32> -> vector<8x8xf32>
    %26 = arith.subf %21, %23 : vector<8x8xf32>
    %27 = arith.subf %25, %21 : vector<8x8xf32>
    %28 = arith.subf %27, %23 : vector<8x8xf32>
    %c1 = arith.constant 1 : index
    %c0_19 = arith.constant 0 : index
    %c0_20 = arith.constant 0 : index
    %29 = vector.load %arg15[%c1, %c0_19, %c0_20] : memref<2x8x8xf32, #tpu.memory_space<vmem>>, vector<1x8x8xf32>
    %30 = vector.shape_cast %29 : vector<1x8x8xf32> to vector<8x8xf32>
    %31 = arith.mulf %8, %30 : vector<8x8xf32>
    %32 = arith.mulf %10, %30 : vector<8x8xf32>
    %33 = arith.addf %31, %32 : vector<8x8xf32>
    %34 = arith.truncf %31 : vector<8x8xf32> to vector<8x8xbf16>
    %cst_21 = arith.constant dense<0.000000e+00> : vector<8x8xf32>
    %35 = tpu.matmul %34, %11, %cst_21 {dimension_numbers = #tpu.dot_dimension_numbers<[1], [0], [0], [1], [0, 0, 1, 1], [], []>} : vector<8x8xbf16>, vector<8x8xbf16>, vector<8x8xf32> -> vector<8x8xf32>
    %36 = arith.truncf %32 : vector<8x8xf32> to vector<8x8xbf16>
    %cst_22 = arith.constant dense<0.000000e+00> : vector<8x8xf32>
    %37 = tpu.matmul %36, %12, %cst_22 {dimension_numbers = #tpu.dot_dimension_numbers<[1], [0], [0], [1], [0, 0, 1, 1], [], []>} : vector<8x8xbf16>, vector<8x8xbf16>, vector<8x8xf32> -> vector<8x8xf32>
    %38 = arith.truncf %33 : vector<8x8xf32> to vector<8x8xbf16>
    %cst_23 = arith.constant dense<0.000000e+00> : vector<8x8xf32>
    %39 = tpu.matmul %38, %14, %cst_23 {dimension_numbers = #tpu.dot_dimension_numbers<[1], [0], [0], [1], [0, 0, 1, 1], [], []>} : vector<8x8xbf16>, vector<8x8xbf16>, vector<8x8xf32> -> vector<8x8xf32>
    %40 = arith.subf %35, %37 : vector<8x8xf32>
    %41 = arith.subf %39, %35 : vector<8x8xf32>
    %42 = arith.subf %41, %37 : vector<8x8xf32>
    %43 = tpu.concatenate %26, %40 in 1 : vector<8x8xf32>, vector<8x8xf32> -> vector<8x16xf32>
    %44 = tpu.concatenate %28, %42 in 1 : vector<8x8xf32>, vector<8x8xf32> -> vector<8x16xf32>
    %45 = arith.addf %43, %44 : vector<8x16xf32>
    %46 = arith.truncf %43 : vector<8x16xf32> to vector<8x16xbf16>
    %c0_24 = arith.constant 0 : index
    %c0_25 = arith.constant 0 : index
    %c0_26 = arith.constant 0 : index
    %47 = vector.load %arg9[%c0_24, %c0_25, %c0_26] : memref<1x16x8xbf16, #tpu.memory_space<vmem>>, vector<1x16x8xbf16>
    %48 = vector.shape_cast %47 : vector<1x16x8xbf16> to vector<16x8xbf16>
    %cst_27 = arith.constant dense<0.000000e+00> : vector<8x8xf32>
    %49 = tpu.matmul %46, %48, %cst_27 {dimension_numbers = #tpu.dot_dimension_numbers<[1], [0], [0], [1], [0, 0, 1, 1], [], []>} : vector<8x16xbf16>, vector<16x8xbf16>, vector<8x8xf32> -> vector<8x8xf32>
    %50 = arith.truncf %44 : vector<8x16xf32> to vector<8x16xbf16>
    %c0_28 = arith.constant 0 : index
    %c0_29 = arith.constant 0 : index
    %c0_30 = arith.constant 0 : index
    %51 = vector.load %arg10[%c0_28, %c0_29, %c0_30] : memref<1x16x8xbf16, #tpu.memory_space<vmem>>, vector<1x16x8xbf16>
    %52 = vector.shape_cast %51 : vector<1x16x8xbf16> to vector<16x8xbf16>
    %cst_31 = arith.constant dense<0.000000e+00> : vector<8x8xf32>
    %53 = tpu.matmul %50, %52, %cst_31 {dimension_numbers = #tpu.dot_dimension_numbers<[1], [0], [0], [1], [0, 0, 1, 1], [], []>} : vector<8x16xbf16>, vector<16x8xbf16>, vector<8x8xf32> -> vector<8x8xf32>
    %54 = arith.truncf %45 : vector<8x16xf32> to vector<8x16xbf16>
    %c0_32 = arith.constant 0 : index
    %c0_33 = arith.constant 0 : index
    %c0_34 = arith.constant 0 : index
    %55 = vector.load %arg11[%c0_32, %c0_33, %c0_34] : memref<1x16x8xbf16, #tpu.memory_space<vmem>>, vector<1x16x8xbf16>
    %56 = vector.shape_cast %55 : vector<1x16x8xbf16> to vector<16x8xbf16>
    %cst_35 = arith.constant dense<0.000000e+00> : vector<8x8xf32>
    %57 = tpu.matmul %54, %56, %cst_35 {dimension_numbers = #tpu.dot_dimension_numbers<[1], [0], [0], [1], [0, 0, 1, 1], [], []>} : vector<8x16xbf16>, vector<16x8xbf16>, vector<8x8xf32> -> vector<8x8xf32>
    %c0_36 = arith.constant 0 : index
    %c0_37 = arith.constant 0 : index
    %58 = vector.load %arg16[%c0_36, %c0_37] : memref<8x8xf32, #tpu.memory_space<vmem>>, vector<8x8xf32>
    %59 = arith.subf %49, %53 : vector<8x8xf32>
    %60 = arith.addf %58, %59 : vector<8x8xf32>
    %c0_38 = arith.constant 0 : index
    %c0_39 = arith.constant 0 : index
    %61 = vector.load %arg16[%c0_38, %c0_39] : memref<8x8xf32, #tpu.memory_space<vmem>>, vector<8x8xf32>
    tpu.vector_store %arg16[%c0_38, %c0_39], %60 {strides = array<i32>} : memref<8x8xf32, #tpu.memory_space<vmem>>, vector<8x8xf32>,
    %c0_40 = arith.constant 0 : index
    %c0_41 = arith.constant 0 : index
    %62 = vector.load %arg17[%c0_40, %c0_41] : memref<8x8xf32, #tpu.memory_space<vmem>>, vector<8x8xf32>
    %63 = arith.subf %57, %49 : vector<8x8xf32>
    %64 = arith.subf %63, %53 : vector<8x8xf32>
    %65 = arith.addf %62, %64 : vector<8x8xf32>
    %c0_42 = arith.constant 0 : index
    %c0_43 = arith.constant 0 : index
    %66 = vector.load %arg17[%c0_42, %c0_43] : memref<8x8xf32, #tpu.memory_space<vmem>>, vector<8x8xf32>
    tpu.vector_store %arg17[%c0_42, %c0_43], %65 {strides = array<i32>} : memref<8x8xf32, #tpu.memory_space<vmem>>, vector<8x8xf32>,
    %c2_i32 = arith.constant 2 : i32
    %67 = arith.cmpi eq, %arg1, %c2_i32 : i32
    %68 = arith.extui %67 : i1 to i32
    %c0_i32_44 = arith.constant 0 : i32
    %69 = arith.cmpi ne, %68, %c0_i32_44 : i32
    scf.if %69 {
      %c0_45 = arith.constant 0 : index
      %c0_46 = arith.constant 0 : index
      %70 = vector.load %arg16[%c0_45, %c0_46] : memref<8x8xf32, #tpu.memory_space<vmem>>, vector<8x8xf32>
      %c0_47 = arith.constant 0 : index
      %c0_48 = arith.constant 0 : index
      %71 = vector.load %arg12[%c0_47, %c0_48] : memref<2x8xf32, #tpu.memory_space<vmem>>, vector<1x8xf32>
      %72 = vector.broadcast %71 : vector<1x8xf32> to vector<8x8xf32>
      %73 = arith.addf %70, %72 : vector<8x8xf32>
      %c0_49 = arith.constant 0 : index
      %c0_50 = arith.constant 0 : index
      %c0_51 = arith.constant 0 : index
      %74 = vector.load %arg13[%c0_49, %c0_50, %c0_51] : memref<1x8x8xf32, #tpu.memory_space<vmem>>, vector<1x8x8xf32>
      %75 = vector.shape_cast %74 : vector<1x8x8xf32> to vector<8x8xf32>
      %76 = vector.shape_cast %73 : vector<8x8xf32> to vector<1x8x8xf32>
      tpu.vector_store %arg13[%c0_49, %c0_50, %c0_51], %76 {strides = array<i32>} : memref<1x8x8xf32, #tpu.memory_space<vmem>>, vector<1x8x8xf32>,
      %c0_52 = arith.constant 0 : index
      %c0_53 = arith.constant 0 : index
      %77 = vector.load %arg17[%c0_52, %c0_53] : memref<8x8xf32, #tpu.memory_space<vmem>>, vector<8x8xf32>
      %c1_54 = arith.constant 1 : index
      %c0_55 = arith.constant 0 : index
      %78 = vector.load %arg12[%c1_54, %c0_55] : memref<2x8xf32, #tpu.memory_space<vmem>>, vector<1x8xf32>
      %79 = vector.broadcast %78 : vector<1x8xf32> to vector<8x8xf32>
      %80 = arith.addf %77, %79 : vector<8x8xf32>
      %c0_56 = arith.constant 0 : index
      %c0_57 = arith.constant 0 : index
      %c0_58 = arith.constant 0 : index
      %81 = vector.load %arg14[%c0_56, %c0_57, %c0_58] : memref<1x8x8xf32, #tpu.memory_space<vmem>>, vector<1x8x8xf32>
      %82 = vector.shape_cast %81 : vector<1x8x8xf32> to vector<8x8xf32>
      %83 = vector.shape_cast %80 : vector<8x8xf32> to vector<1x8x8xf32>
      tpu.vector_store %arg14[%c0_56, %c0_57, %c0_58], %83 {strides = array<i32>} : memref<1x8x8xf32, #tpu.memory_space<vmem>>, vector<1x8x8xf32>,
    } else {
    }
    return
  }
  func.func @transform_0(%arg0: i32, %arg1: i32) -> (i32, i32, i32, i32) {
    %c0_i32 = arith.constant 0 : i32
    %c0_i32_0 = arith.constant 0 : i32
    %c0_i32_1 = arith.constant 0 : i32
    return %arg0, %arg1, %c0_i32, %c0_i32_0 : i32, i32, i32, i32
  }
  func.func @transform_1(%arg0: i32, %arg1: i32) -> (i32, i32, i32, i32) {
    %c0_i32 = arith.constant 0 : i32
    %c0_i32_0 = arith.constant 0 : i32
    %c0_i32_1 = arith.constant 0 : i32
    return %arg0, %arg1, %c0_i32, %c0_i32_0 : i32, i32, i32, i32
  }
  func.func @transform_2(%arg0: i32, %arg1: i32) -> (i32, i32, i32) {
    %c0_i32 = arith.constant 0 : i32
    %c0_i32_0 = arith.constant 0 : i32
    %c0_i32_1 = arith.constant 0 : i32
    return %arg0, %c0_i32, %c0_i32_0 : i32, i32, i32
  }
  func.func @transform_3(%arg0: i32, %arg1: i32) -> (i32, i32, i32) {
    %c0_i32 = arith.constant 0 : i32
    %c0_i32_0 = arith.constant 0 : i32
    %c0_i32_1 = arith.constant 0 : i32
    return %arg0, %c0_i32, %c0_i32_0 : i32, i32, i32
  }
  func.func @transform_4(%arg0: i32, %arg1: i32) -> (i32, i32, i32) {
    %c0_i32 = arith.constant 0 : i32
    %c0_i32_0 = arith.constant 0 : i32
    %c0_i32_1 = arith.constant 0 : i32
    return %arg0, %c0_i32, %c0_i32_0 : i32, i32, i32
  }
  func.func @transform_5(%arg0: i32, %arg1: i32) -> (i32, i32) {
    %c0_i32 = arith.constant 0 : i32
    %c0_i32_0 = arith.constant 0 : i32
    %c0_i32_1 = arith.constant 0 : i32
    return %c0_i32, %c0_i32_0 : i32, i32
  }
  func.func @transform_6(%arg0: i32, %arg1: i32) -> i32 {
    %c0_i32 = arith.constant 0 : i32
    %c0_i32_0 = arith.constant 0 : i32
    return %c0_i32 : i32
  }
  func.func @transform_7(%arg0: i32, %arg1: i32) -> (i32, i32, i32) {
    %c0_i32 = arith.constant 0 : i32
    %c0_i32_0 = arith.constant 0 : i32
    %c0_i32_1 = arith.constant 0 : i32
    return %arg1, %c0_i32, %c0_i32_0 : i32, i32, i32
  }
  func.func @transform_8(%arg0: i32, %arg1: i32) -> (i32, i32, i32) {
    %c0_i32 = arith.constant 0 : i32
    %c0_i32_0 = arith.constant 0 : i32
    %c0_i32_1 = arith.constant 0 : i32
    return %arg1, %c0_i32, %c0_i32_0 : i32, i32, i32
  }
  func.func @transform_9(%arg0: i32, %arg1: i32) -> (i32, i32, i32) {
    %c0_i32 = arith.constant 0 : i32
    %c0_i32_0 = arith.constant 0 : i32
    %c0_i32_1 = arith.constant 0 : i32
    return %arg1, %c0_i32, %c0_i32_0 : i32, i32, i32
  }
  func.func @transform_10(%arg0: i32, %arg1: i32) -> (i32, i32) {
    %c0_i32 = arith.constant 0 : i32
    %c0_i32_0 = arith.constant 0 : i32
    %c0_i32_1 = arith.constant 0 : i32
    return %c0_i32, %c0_i32_0 : i32, i32
  }
  func.func @transform_11(%arg0: i32, %arg1: i32) -> (i32, i32, i32) {
    %c0_i32 = arith.constant 0 : i32
    %c0_i32_0 = arith.constant 0 : i32
    %c0_i32_1 = arith.constant 0 : i32
    return %arg0, %c0_i32, %c0_i32_0 : i32, i32, i32
  }
  func.func @transform_12(%arg0: i32, %arg1: i32) -> (i32, i32, i32) {
    %c0_i32 = arith.constant 0 : i32
    %c0_i32_0 = arith.constant 0 : i32
    %c0_i32_1 = arith.constant 0 : i32
    return %arg0, %c0_i32, %c0_i32_0 : i32, i32, i32
  }
}

</mosaic_0001>

<bundles_post_ra>
// kernel: chebnet_forward.13
= control target key start
LH: loop header
LB: loop body
LE: loop exit
PB: predicated region body
PF: predicated region fallthrough
CT: control target
= control target key end

     0   :  { %s961_s0 = inlined_call_operand.vmem [shape: f32[2,3,8], index: 0, kind: input, shape index: {}]   ;;  %s962_s1 = inlined_call_operand.vmem [shape: f32[8,4], index: 1, kind: input, shape index: {}]   ;;  %s963_s2 = inlined_call_operand.vmem [shape: f32[1,4], index: 2, kind: input, shape index: {}]   ;;  %s964_s3 = inlined_call_operand.vmem [shape: f32[4,1], index: 3, kind: input, shape index: {}]   ;;  %s965_s4 = inlined_call_operand.<no memory space> [shape: f32[1,1], index: 4, kind: input, shape index: {}]   ;;  %s966_s5 = inlined_call_operand.vmem [shape: f32[8,10], index: 5, kind: input, shape index: {}]   ;;  %s967_s6 = inlined_call_operand.vmem [shape: f32[1,10], index: 6, kind: input, shape index: {}]   ;;  %s968_s7 = inlined_call_operand.hbm [shape: f32[2,5], index: 7, kind: output, shape index: {0}]   ;;  %s969_s8 = inlined_call_operand.hbm [shape: f32[2,5], index: 8, kind: output, shape index: {1}]  }
   0x1   :  { %v14_v0 = vstv %s965_s4 }
   0x2   :  { %15 = vst [vmem:[#allocation2] sm:$0x1] %v14_v0 }
   0x3   :  { %16 = vsyncpa [#allocation4], 0  ;;  %v32_v1 = vld [vmem:[%s962_s1] sm:$0xff]  ;;  %v820_v2 = vmov 0.0   ;;  %vm821_vm0 = vmmov 0   ;;  %vm47_vm1 = vcmask 1041409  }
   0x4   :  { %714 = vmatprep.subr.mxu0 %v820_v2  ;;  %716 = vmatprep.mubr.msk.f32.mxu0 %vm821_vm0, %v820_v2  ;;  %v885_v3 = vld [vmem:[%s961_s0] sm:$0x1]  ;;  %v890_v4 = vld [vmem:[%s961_s0 + $0x4] sm:$0x1]  ;;  %vm49_vm2 = vcmask 64512  }
   0x5   :  { %715 = vmatpush3.msra.mxu0 %v32_v1  ;;  %v46_v5 = vrot.slane %v890_v4, 7  ;;  %v896_v6 = vld [vmem:[%s961_s0 + $0x5] sm:$0x1]  ;;  %719 = vmatprep.subr.mxu1 %v820_v2  ;;  %v901_v7 = vld [vmem:[%s961_s0 + $0x1] sm:$0x1] }
   0x6   :  { %724 = vmatprep.subr.mxu0 %v820_v2  ;;  %v211_v8 = vrot.slane %v896_v6, 7  ;;  %v907_v9 = vld [vmem:[%s961_s0 + $0x6] sm:$0x1]  ;;  %721 = vmatprep.mubr.msk.f32.mxu1 %vm821_vm0, %v820_v2 }
   0x7   :  { %v48_v10 = vsel %vm47_vm1, %v46_v5, %v885_v3 }
   0x8   :  { %17 = vsyncpa [#allocation6], 0  ;;  %717 = vmatmul.mubr.msk.f32.vlgmr.msra.gmra.mxu0 %vm49_vm2, %v48_v10  ;;  %v212_v11 = vsel %vm47_vm1, %v211_v8, %v901_v7  ;;  %v363_v12 = vrot.slane %v907_v9, 7  ;;  %v920_v13 = vld [vmem:[%s961_s0 + $0x2] sm:$0x1]  ;;  %vm133_vm3 = vcmask 1043456  }
   0x9   :  { %725 = vmatpush3.msra.mxu0 %v32_v1  ;;  %726 = vmatprep.mubr.msk.f32.mxu0 %vm821_vm0, %v820_v2  ;;  %v34_v15 = vld [vmem:[%s964_s3] sm:$0xf]  ;;  %vm129_vm4 = vcmask 31744   ;;  %s823_s3 = smov 2   ;;  %vm519_vm5 = vcmask 7168   ;;  %vm521_vm6 = vcmask 15360  }
   0xa   :  { %734 = vmatprep.subr.mxu0 %v820_v2  ;;  %v364_v14 = vsel %vm47_vm1, %v363_v12, %v920_v13  ;;  %720 = vmatpush3.msk.msra.mxu1 %vm133_vm3, %v34_v15  ;;  %v687_v16 = vld [vmem:[%s963_s2] ss:$0 sm:$0xff]  ;;  %s822_s2 = smov 1   ;;  %vm523_vm7 = vcmask 17408   ;;  %v824_v49 = vmov 1   ;;  %v825_v50 = vmov 0  }
   0xb   :  { %729 = vmatprep.subr.mxu1 %v820_v2  ;;  %v689_v29 = vld [vmem:[#allocation2] ss:$0 sm:$0xff]  ;;  %760 = vset.pattern.permute.xlu1 %v824_v49  ;;  %v826_v54 = vmov 2   ;;  %s827_s25 = smov [#allocation3]   ;;  %vm652_vm8 = vcmask 33792   ;;  %s828_s27 = smov 123  }
   0xc   :  { %727 = vmatmul.mubr.msk.f32.vlgmr.msra.gmra.mxu0 %vm49_vm2, %v212_v11  ;;  %759 = vset.pattern.permute.xlu0 %v825_v50  ;;  %v568_v55 = vld [vmem:[%s966_s5] sm:$0xff]  ;;  %s665_s26 = sshll.u32 %s827_s25, 4  ;;  %s666_s26 = int_to_ptr.vmem [resolvable:$true] %s665_s26 }
   0xd   :  { %735 = vmatpush3.msra.mxu0 %v32_v1  ;;  %736 = vmatprep.mubr.msk.f32.mxu0 %vm821_vm0, %v820_v2  ;;  %s776_s28 = scalar_lea.vmem %s666_s26, 32  ;;  %p781_p1 = scmp.lt.s32.totalorder %s666_s26, %s666_s26 }
   0xe   :  { %744 = vmatprep.subr.mxu0 %v820_v2  ;;  %p777_p0 = scmp.ne.s32.totalorder %s666_s26, %s776_s28  ;;  %p782_p2 = scmp.lt.s32.totalorder %s776_s28, %s776_s28 }
  0x10   :  { %737 = vmatmul.mubr.msk.f32.vlgmr.msra.gmra.mxu0 %vm49_vm2, %v364_v14  ;;  %p783_p3 = por %p782_p2, %p781_p1 }
  0x11   :  { %746 = vmatprep.mubr.msk.f32.mxu0 %vm821_vm0, %v820_v2  ;;  %745 = vmatpush3.msra.mxu0 %v568_v55 }
  0x12   :  { %p784_p4 = pnand %p783_p3, %p777_p0 }
  0xc8   :  { %v118_v17 = vpop.f32.mrf.mxu0 }
  0xc9   :  { %v119_v18 = vadd.f32 %v687_v16, %v118_v17 }
  0xca   :  { %v718_v19 = vpop.f32.mrf.mxu0 }
  0xcb   :  { %762 = vtanh.f32 %v119_v18 }
  0xcc   :  { %v281_v20 = vpop.f32.mrf.mxu0 }
  0xcd   :  { %v282_v21 = vadd.f32 %v687_v16, %v281_v20 }
  0xce   :  { %v728_v22 = vpop.f32.mrf.mxu0 }
  0xcf   :  { %764 = vtanh.f32 %v282_v21 }
  0xd0   :  { %v433_v23 = vpop.f32.mrf.mxu0 }
  0xd1   :  { %v434_v24 = vadd.f32 %v687_v16, %v433_v23 }
  0xd2   :  { %v738_v25 = vpop.f32.mrf.mxu0 }
  0xd3   :  { %766 = vtanh.f32 %v434_v24 }
  0xd8   :  { %v763_v26 = vpop.eup %762 }
  0xd9   :  { %722 = vmatmul.mubr.msk.f32.vlgmr.msra.gmra.mxu1 %vm129_vm4, %v763_v26 }
  0xda   :  { %730 = vmatpush3.msk.msra.mxu1 %vm133_vm3, %v34_v15  ;;  %731 = vmatprep.mubr.msk.f32.mxu1 %vm821_vm0, %v820_v2 }
  0xdb   :  { %739 = vmatprep.subr.mxu1 %v820_v2 }
  0xdc   :  { %v765_v27 = vpop.eup %764 }
  0xdd   :  { %732 = vmatmul.mubr.msk.f32.vlgmr.msra.gmra.mxu1 %vm129_vm4, %v765_v27 }
  0xde   :  { %740 = vmatpush3.msk.msra.mxu1 %vm133_vm3, %v34_v15  ;;  %741 = vmatprep.mubr.msk.f32.mxu1 %vm821_vm0, %v820_v2 }
  0xe0   :  { %v767_v28 = vpop.eup %766 }
  0xe1   :  { %742 = vmatmul.mubr.msk.f32.vlgmr.msra.gmra.mxu1 %vm129_vm4, %v767_v28 }
 0x199   :  { %v203_v30 = vpop.f32.mrf.mxu1 }
 0x19a   :  { %v204_v31 = vadd.f32 %v689_v29, %v203_v30 }
 0x19b   :  { %v723_v32 = vpop.f32.mrf.mxu1 }
 0x19d   :  { %v355_v33 = vpop.f32.mrf.mxu1 }
 0x19e   :  { %v356_v34 = vadd.f32 %v689_v29, %v355_v33 }
 0x19f   :  { %v733_v35 = vpop.f32.mrf.mxu1 }
 0x1a0   :  { %512 = vrot.lane.b32.xlu0 %v356_v34, %s822_s2 }
 0x1a1   :  { %v507_v36 = vpop.f32.mrf.mxu1 }
 0x1a2   :  { %v508_v37 = vadd.f32 %v689_v29, %v507_v36 }
 0x1a3   :  { %v743_v38 = vpop.f32.mrf.mxu1 }
 0x1a4   :  { %516 = vrot.lane.b32.xlu0 %v508_v37, %s823_s3 }
 0x212   :  { %v513_v39 = vpop.permute.xlu0 %512 }
 0x213   :  { %v520_v40 = vsel %vm519_vm5, %v204_v31, %v513_v39 }
 0x216   :  { %v517_v41 = vpop.permute.xlu0 %516 }
 0x217   :  { %v522_v42 = vsel %vm521_vm6, %v520_v40, %v517_v41 }
 0x218   :  { %v524_v43 = vsel %vm523_vm7, %v522_v42, -inf }
 0x219   :  { %525 = vmax.xlane.f32.xlu1 %v524_v43 }
 0x2a2   :  { %v526_v44 = vpop.xlane.xlu1 %525 }
 0x2a3   :  { %v527_v45 = vsub.f32 %v522_v42, %v526_v44 }
 0x2a5   :  { %v528_v46 = vmul.f32 1.442695, %v527_v45 }
 0x2a7   :  { %768 = vpow2.f32 %v528_v46 }
 0x2b4   :  { %v769_v47 = vpop.eup %768 }
 0x2b5   :  { %v530_v48 = vsel %vm523_vm7, %v769_v47, 0.0 }
 0x2b6   :  { %531 = vadd.xlane.f32.xlu1 %v530_v48 }
 0x33f   :  { %v532_v51 = vpop.xlane.xlu1 %531 }
 0x340   :  { %770 = vrcp.f32 %v532_v51 }
 0x34d   :  { %v771_v52 = vpop.eup %770 }
 0x34e   :  { %v534_v53 = vmul.f32 %v771_v52, %v769_v47 }
 0x350   :  { %547 = vperm.xlu1 %760, %v534_v53   ;;  %537 = vperm.xlu0 %759, %v534_v53  }
 0x354   :  { %761 = vset.pattern.permute.xlu0 %v826_v54 }
 0x355   :  { %557 = vperm.xlu0 %761, %v534_v53  }
 0x3cb   :  { %v548_v56 = vpop.permute.xlu1 %547  ;;  %v538_v57 = vpop.permute.xlu0 %537 }
 0x3cc   :  { %v549_v58 = vrot.slane %v548_v56, 1  ;;  %v539_v59 = vrot.slane %v538_v57, 1  ;;  %v552_v60 = vmul.f32 %v548_v56, %v901_v7  ;;  %v542_v62 = vmul.f32 %v538_v57, %v885_v3  ;;  %v698_v3 = vld [vmem:[%s967_s6] ss:$0 sm:$0xff] }
 0x3ce   :  { %v553_v61 = vmul.f32 %v549_v58, %v896_v6  ;;  %v543_v63 = vmul.f32 %v539_v59, %v890_v4  ;;  %v554_v5 = vadd.f32 %v552_v60, %v542_v62 }
 0x3d0   :  { %v558_v0 = vpop.permute.xlu0 %557  ;;  %v555_v8 = vadd.f32 %v553_v61, %v543_v63 }
 0x3d1   :  { %v559_v1 = vrot.slane %v558_v0, 1  ;;  %v562_v2 = vmul.f32 %v558_v0, %v920_v13 }
 0x3d3   :  { %v563_v10 = vmul.f32 %v559_v1, %v907_v9  ;;  %v564_v11 = vadd.f32 %v562_v2, %v554_v5 }
 0x3d5   :  { %v565_v12 = vadd.f32 %v563_v10, %v555_v8 }
 0x3d7   :  { %772 = vtanh.f32 %v565_v12 }
 0x3d8   :  { %774 = vtanh.f32 %v564_v11 }
 0x3e4   :  { %v773_v14 = vpop.eup %772 }
 0x3e5   :  { %v578_v7 = vrot.slane %v773_v14, 7  ;;  %v775_v15 = vpop.eup %774 }
 0x3e7   :  { %v579_v6 = vsel %vm47_vm1, %v578_v7, %v775_v15 }
 0x3e8   :  { %747 = vmatmul.mubr.msk.f32.vlgmr.msra.gmra.mxu0 %vm49_vm2, %v579_v6 }
 0x4a8   :  { %v648_v4 = vpop.f32.mrf.mxu0 }
 0x4a9   :  { %v649_v9 = vadd.f32 %v698_v3, %v648_v4 }
 0x4aa   :  { %v748_v13 = vpop.f32.mrf.mxu0 }
 0x4ab   :  { %655 = vrot.lane.b32.xlu0 %v649_v9, %s828_s27  ;;  %653 = vst.msk [vmem:[#allocation3] sm:$0x3] %vm652_vm8, %v649_v9 }
 0x4ac   :  { %787 = shalt.err (!%p784_p4)
}
 0x4ad   :  { %668 = dma.vmem_to_hbm [thread:$0]  %s666_s26, 32, %s968_s7, [#allocation4]  }
 0x4ae   :  { %s829_s30 = smov [#allocation5]  }
 0x4af   :  { %s675_s9 = sshll.u32 %s829_s30, 4  ;;  %s676_s9 = int_to_ptr.vmem [resolvable:$true] %s675_s9 }
 0x4b0   :  { %s796_s10 = scalar_lea.vmem %s676_s9, 32  ;;  %p801_p6 = scmp.lt.s32.totalorder %s676_s9, %s676_s9 }
 0x4b1   :  { %p797_p5 = scmp.ne.s32.totalorder %s676_s9, %s796_s10  ;;  %p802_p7 = scmp.lt.s32.totalorder %s796_s10, %s796_s10 }
 0x4b3   :  { %p803_p8 = por %p802_p7, %p801_p6 }
 0x4b5   :  { %p804_p9 = pnand %p803_p8, %p797_p5 }
 0x51d   :  { %v656_v16 = vpop.permute.xlu0 %655 }
 0x51e   :  { %658 = vst.msk [vmem:[#allocation5] sm:$0x3] %vm652_vm8, %v656_v16 }
 0x51f   :  { %807 = shalt.err (!%p804_p9)
}
 0x520   :  { %678 = dma.vmem_to_hbm [thread:$0]  %s676_s9, 32, %s969_s8, [#allocation6]  }
 0x521   :  { %816 = dma.done.wait [#allocation4], 32  }
 0x522   :  { %817 = vsyncadd [#allocation4], 4294967264 }
 0x523   :  { %818 = dma.done.wait [#allocation6], 32  }
 0x524   :  { %819 = vsyncadd [#allocation6], 4294967264 }
 0x525   :  { %685 = vsyncpa [#allocation4], 1 }
 0x526   :  { %686 = vsyncpa [#allocation6], 1 }

// kernel: chebnet_forward.7
= control target key start
LH: loop header
LB: loop body
LE: loop exit
PB: predicated region body
PF: predicated region fallthrough
CT: control target
= control target key end

     0   :  { %s2164_s0 = inlined_call_operand.vmem [shape: f32[2,3,8,8], index: 0, kind: input, shape index: {}]   ;;  %s2165_s1 = inlined_call_operand.vmem [shape: f32[2,3,8,8], index: 1, kind: input, shape index: {}]   ;;  %s2166_s2 = inlined_call_operand.vmem [shape: f32[2,8,8], index: 2, kind: input, shape index: {}]   ;;  %s2167_s3 = inlined_call_operand.vmem [shape: f32[2,8,4], index: 3, kind: input, shape index: {}]   ;;  %s2168_s4 = inlined_call_operand.vmem [shape: f32[2,8,4], index: 4, kind: input, shape index: {}]   ;;  %s2169_s5 = inlined_call_operand.vmem [shape: f32[8,8], index: 5, kind: input, shape index: {}]   ;;  %s2170_s6 = inlined_call_operand.vmem [shape: f32[6], index: 6, kind: input, shape index: {}]   ;;  %s2171_s7 = inlined_call_operand.vmem [shape: bf16[3,8,8], index: 7, kind: input, shape index: {}]   ;;  %s2172_s8 = inlined_call_operand.vmem [shape: bf16[3,8,8], index: 8, kind: input, shape index: {}]   ;;  %s2173_s9 = inlined_call_operand.vmem [shape: bf16[3,8,8], index: 9, kind: input, shape index: {}]   ;;  %s2174_s10 = inlined_call_operand.vmem [shape: f32[2,8], index: 10, kind: input, shape index: {}]   ;;  %s2175_s11 = inlined_call_operand.vmem [shape: f32[2,8,8], index: 11, kind: output, shape index: {0}]   ;;  %s2176_s12 = inlined_call_operand.vmem [shape: f32[2,8,8], index: 12, kind: output, shape index: {1}]  }
   0x1   :  { %2179 = sst [smem:[#allocation12_spill]] %s2164_s0 }
   0x2   :  { %2180 = sst [smem:[#allocation13_spill]] %s2167_s3 }
   0x3   :  { %2181 = sst [smem:[#allocation14_spill]] %s2168_s4 }
   0x4   :  { %2182 = sst [smem:[#allocation15_spill]] %s2170_s6 }
   0x5   :  { %18 = vsyncpa [#allocation6], 0  ;;  %s1918_s21 = smov 0   ;;  %s1920_s22 = smov 0  }
   0x6   :  { %s1922_s23 = smov 0   ;;  %s1924_s24 = smov 0  }
   0x7   :  { %s1926_s25 = smov 0  }
   0x8 LB: > { %2183 = sst [smem:[#allocation8_spill]] %s1832_s23  ;;  %s1581_s26 = sadd.s32 4294967295, %s1840_s25   ;;  %s1840_s25 = sphi %s1926_s25, %s24_s25   ;;  %s1836_s24 = sphi %s1924_s24, %s2197_s24   ;;  %s1832_s23 = sphi %s1922_s23, %s2196_s23   ;;  %s1828_s22 = sphi %s1920_s22, %s2195_s22   ;;  %s1824_s21 = sphi %s1918_s21, %s2194_s21  }
   0x9   : > { %2184 = sst [smem:[#allocation9_spill]] %s1836_s24  ;;  %s33_s27 = sadd.s32 1, %s1832_s23 }
   0xa   : > { %p34_p0 = scmp.ge.s32.totalorder %s33_s27, 3  ;;  %s36_s28 = sadd.s32 1, %s1836_s24 }
   0xb   : > { %p1583_p1 = scmp.ge.s32.totalorder %s1840_s25, 1  ;;  %p368_p2 = scmp.lt.s32.totalorder %s1840_s25, 7 }
   0xc   : > { %s2199_s27 = smov (%p34_p0, %s33_s27), 0  ;;  %s2201_s28 = smov (!%p34_p0, %s36_s28), %s1836_s24 }
   0xd   : > { %2185 = sst [smem:[#allocation10_spill]] %s2199_s27  ;;  %p1951_p3 = pnand %p1583_p1, %p368_p2 }
   0xe   : > { %p38_p4 = scmp.ge.s32.totalorder %s2201_s28, 2  ;;  %p1955_p5 = scmp.eq.s32.totalorder %s1581_s26, 0 }
   0xf   : > { %p1713_p6 = pneg %p1951_p3  ;;  %s2188_s6 = sld [smem:[#allocation15_spill]] }
  0x10   : > { %s2203_s28 = smov (%p38_p4, %s2201_s28), 0 }
  0x11   : > { %2189 = sst [smem:[#allocation11_spill]] %s2203_s28  ;;  %p1714_p7 = pnand %p1955_p5, %p1713_p6 }
  0x13   : > { %p1785_p9 = pneg %p1714_p7 }
  0x15   : > { %s384_s15 = sshll.u32 %s2188_s6, 4  ;;  %s385_s15 = int_to_ptr.vmem [resolvable:$true] %s384_s15 }
  0x16   : > { %s1783_s16 = scalar_lea.vmem %s385_s15, 16  ;;  %p1791_p12 = scmp.lt.s32.totalorder %s385_s15, %s385_s15 }
  0x17   : > { %p1784_p8 = scmp.ne.s32.totalorder %s385_s15, %s1783_s16  ;;  %p1792_p13 = scmp.lt.s32.totalorder %s1783_s16, %s1783_s16 }
  0x19   : > { %p1786_p10 = pnand %p1785_p9, %p1784_p8  ;;  %p1793_p0 = por %p1792_p13, %p1791_p12 }
  0x1b   : > { %p1787_p11 = pneg %p1786_p10 }
  0x1d   : > { %p1794_p1 = pnand %p1793_p0, %p1787_p11 }
  0x1f   : > { %1797 = shalt.err (!%p1794_p1)
}
  0x20   : > { %s1842_s17 = smov [#allocation5]   ;;  %464 = sbr.rel (%p1951_p3) target bundleno = 1380 (0x564), region = 64 }
  0x21   : > { %1716 = dma.vmem_to_smem (!%p1714_p7), %s385_s15, 16, %s1842_s17, [#allocation6]  }
  0x25   : > { %1819 = dma.done.wait (%p1955_p5), [#allocation6], 16  }
  0x26   : > { %1821 = vsyncadd (%p1955_p5), [#allocation6], 4294967280 }
  0x27   : > { %470 = sfence }
  0x28   : > { %p545_p2 = scmp.lt.s32.totalorder %s1828_s22, 1  ;;  %p547_p4 = scmp.lt.s32.totalorder %s1824_s21, 2 }
  0x29   : > { %s2190_s3 = sld [smem:[#allocation13_spill]]  ;;  %p1598_p3 = scmp.ne.s32.totalorder %s1824_s21, 0 }
  0x2a   : > { %s2205_s22 = smov (!%p545_p2, %s1828_s22), 1  ;;  %s2191_s4 = sld [smem:[#allocation14_spill]] }
  0x2b   : > { %s548_s18 = scalar_select %p547_p4, %s1824_s21, 2 }
  0x2c   : > { %s1708_s19 = smul.u32 3, %s2205_s22  ;;  %s1978_s20 = sshll.u32 %s2205_s22, 3 }
  0x2d   : > { %s1994_s27 = sshll.u32 %s548_s18, 2  ;;  %s2192_s0 = sld [smem:[#allocation12_spill]] }
  0x2e   : > { %s550_s16 = sadd.s32 %s1708_s19, %s548_s18  ;;  %s576_s18 = scalar_lea.vmem %s2171_s7, %s1994_s27 }
  0x2f   : > { %s568_s15 = scalar_lea.vmem %s2190_s3, %s1978_s20  ;;  %s1588_s22 = sshll.u32 %s550_s16, 3 }
  0x30   : > { %s572_s28 = scalar_lea.vmem %s2191_s4, %s1978_s20  ;;  %v1992_v0 = vld [vmem:[%s568_s15] sm:$0xff]  ;;  %s2006_s6 = scalar_lea.vmem %s2165_s1, %s1588_s22 }
  0x31   : > { %v1996_v1 = vld [vmem:[%s572_s28] sm:$0xff]  ;;  %s580_s3 = scalar_lea.vmem %s2172_s8, %s1994_s27  ;;  %s584_s24 = scalar_lea.vmem %s2173_s9, %s1994_s27 }
  0x32   : > { %599 = sbr.rel (%p1598_p3) target bundleno = 826 (0x33a), region = 72  ;;  %s1847_s23 = smov (!%p1598_p3), 124  }
  0x33   : > { %s2001_s13 = scalar_lea.vmem %s2192_s0, %s1588_s22  ;;  %s588_s0 = scalar_lea.vmem %s2175_s11, %s1978_s20 }
  0x34   : > { %s592_s22 = scalar_lea.vmem %s2176_s12, %s1978_s20  ;;  %s2039_s17 = sld [smem:[#allocation5]] (!%p1598_p3) }
  0x35   : > { %s1605_s16 = sld [smem:[#allocation5 + $0x2]] (!%p1598_p3)  ;;  %s2193_s4 = scalar_lea.vmem (!%p1598_p3), %s2166_s2, %s1978_s20 }
  0x36   : > { %s1606_s28 = sld [smem:[#allocation5 + $0x1]] (!%p1598_p3) }
  0x37   : > { %v601_v2 = vld [vmem:[%s2169_s5 + $0x4] sm:$0xf]  ;;  %vm606_vm0 = vcmask 1043456   ;;  %v1843_v3 = vmov 0.0   ;;  %v600_v4 = vld [vmem:[%s2169_s5] sm:$0xf]  ;;  %v800_v15 = vlaneseq }
  0x38   : > { %1644 = vmatprep.subr.mxu0 %v1843_v3  ;;  %1649 = vmatprep.subr.mxu1 %v1843_v3  ;;  %vm602_vm1 = vcmask 31744   ;;  %vm1844_vm2 = vmmov 0   ;;  %v1845_v5 = vmov 2   ;;  %v1846_v6 = vmov 0   ;;  %s1607_s26 = sld [smem:[#allocation5 + $0x3]]  ;;  %v792_v38 = vld [vmem:[%s2193_s4] sm:$0xff] }
  0x39   : > { %1645 = vmatpush3.msk.msra.mxu0 %vm606_vm0, %v601_v2  ;;  %1646 = vmatprep.mubr.msk.f32.mxu0 %vm1844_vm2, %v1843_v3  ;;  %v1848_v12 = vmov 1   ;;  %v1849_v13 = vmov 3   ;;  %vm833_vm3 = vcmask 64512   ;;  %v801_v17 = vshrl.u32 %v800_v15, 7  ;;  %s2041_s29 = sld [smem:[#allocation5 + $0x4]] }
  0x3a   : > { %1650 = vmatpush3.msk.msra.mxu1 %vm606_vm0, %v600_v4  ;;  %1651 = vmatprep.mubr.msk.f32.mxu1 %vm1844_vm2, %v1843_v3  ;;  %894 = vst.msk [vmem:[#allocation3] sm:$0xff] %vm833_vm3, %v1843_v3  ;;  %895 = vst.msk [vmem:[#allocation4] sm:$0xff] %vm833_vm3, %v1843_v3  ;;  %s2043_s19 = sld [smem:[#allocation5 + $0x5]]  ;;  %v806_v30 = vstv %s2039_s17  ;;  %vm793_vm4 = vcmp.gt.f32.partialorder %v792_v38, 0.5 }
  0x3b   : > { %1647 = vmatmul.mubr.msk.f32.vlgmr.msra.gmra.mxu0 %vm602_vm1, %v1996_v1  ;;  %1652 = vmatmul.mubr.msk.f32.vlgmr.msra.gmra.mxu1 %vm602_vm1, %v1992_v0  ;;  %v802_v20 = vsub.s32 0, %v801_v17  ;;  %v814_v21 = vsub.s32 2, %v801_v17  ;;  %v852_v22 = vsub.s32 1, %v801_v17  ;;  %v864_v23 = vsub.s32 3, %v801_v17 }
  0x3c   : > { %1771 = vset.pattern.permute.xlu1 %v1845_v5  ;;  %1770 = vset.pattern.permute.xlu0 %v1846_v6  ;;  %v818_v31 = vstv %s1605_s16  ;;  %v856_v32 = vstv %s1606_s28 }
  0x3e   : > { %v868_v33 = vstv %s1607_s26 }
  0x3f   : > { %v821_v39 = vstv %s2041_s29 }
  0x40   : > { %v825_v40 = vstv %s2043_s19 }
  0xfb   : > { %v676_v7 = vpop.f32.mrf.mxu0  ;;  %v752_v8 = vpop.f32.mrf.mxu1 }
  0xfc   : > { %v753_v9 = vadd.f32 %v752_v8, %v676_v7 }
  0xfd   : > { %v1648_v10 = vpop.f32.mrf.mxu0  ;;  %v1653_v11 = vpop.f32.mrf.mxu1 }
  0xfe   : > { %809 = vperm.xlu1 %1771, %v753_v9   ;;  %757 = vrot.lane.b32.xlu0 %v753_v9, %s1847_s23 }
 0x102   : > { %1772 = vset.pattern.permute.xlu1 %v1848_v12  ;;  %797 = vperm.xlu0 %1770, %v753_v9  }
 0x103   : > { %847 = vperm.xlu1 %1772, %v753_v9  }
 0x107   : > { %1773 = vset.pattern.permute.xlu1 %v1849_v13 }
 0x108   : > { %859 = vperm.xlu1 %1773, %v753_v9  }
 0x170   : > { %v758_v14 = vpop.permute.xlu0 %757 }
 0x171   : > { %760 = vxpose.xlu0.b32.start.end [1/1] (short) (narrow) %v758_v14, 8 }
 0x179   : > { %v810_v16 = vpop.permute.xlu1 %809 }
 0x17d   : > { %v798_v18 = vpop.permute.xlu0 %797 }
 0x17e   : > { %v848_v19 = vpop.permute.xlu1 %847 }
 0x183   : > { %v860_v29 = vpop.permute.xlu1 %859 }
 0x19a   : > { %1774 = vset.pattern.permute.xlu0 %v1849_v13 }
 0x1ed   : > { %v776_v24 = vpop.trf.xlu0 }
 0x1ee   : > { %v803_v25 = vrot.slane %v776_v24, %v802_v20  ;;  %v815_v26 = vrot.slane %v776_v24, %v814_v21  ;;  %v853_v27 = vrot.slane %v776_v24, %v852_v22  ;;  %v865_v28 = vrot.slane %v776_v24, %v864_v23 }
 0x1f0   : > { %v804_v34 = vadd.f32 %v803_v25, %v798_v18  ;;  %v816_v35 = vadd.f32 %v815_v26, %v810_v16  ;;  %v854_v36 = vadd.f32 %v853_v27, %v848_v19  ;;  %v866_v37 = vadd.f32 %v865_v28, %v860_v29 }
 0x1f2   : > { %v807_v41 = vadd.f32 %v806_v30, %v804_v34  ;;  %v819_v42 = vadd.f32 %v818_v31, %v816_v35  ;;  %v857_v43 = vadd.f32 %v856_v32, %v854_v36  ;;  %v869_v44 = vadd.f32 %v868_v33, %v866_v37 }
 0x1f4   : > { %vm870_vm5 = vcmp.gt.f32.partialorder %v857_v43, 0.0  ;;  %v871_v45 = vmul.f32 %v857_v43, %v821_v39  ;;  %vm873_vm6 = vcmp.gt.f32.partialorder %v869_v44, 0.0  ;;  %v874_v46 = vmul.f32 %v869_v44, %v825_v40 }
 0x1f5   : > { %vm820_vm7 = vcmp.gt.f32.partialorder %v807_v41, 0.0  ;;  %v822_v47 = vmul.f32 %v821_v39, %v807_v41  ;;  %vm824_vm8 = vcmp.gt.f32.partialorder %v819_v42, 0.0  ;;  %v826_v48 = vmul.f32 %v825_v40, %v819_v42 }
 0x1f6   : > { %v872_v49 = vsel %vm870_vm5, %v857_v43, %v871_v45  ;;  %v875_v50 = vsel %vm873_vm6, %v869_v44, %v874_v46 }
 0x1f7   : > { %v876_v51 = vsel %vm793_vm4, %v872_v49, -1e+09  ;;  %v877_v52 = vsel %vm793_vm4, %v875_v50, -1e+09  ;;  %v823_v53 = vsel %vm820_vm7, %v807_v41, %v822_v47  ;;  %v827_v54 = vsel %vm824_vm8, %v819_v42, %v826_v48 }
 0x1f8   : > { %v878_v55 = vmul.f32 %v876_v51, %v876_v51  ;;  %v879_v56 = vmul.f32 %v877_v52, %v877_v52  ;;  %v828_v57 = vsel %vm793_vm4, %v823_v53, -1e+09  ;;  %v829_v58 = vsel %vm793_vm4, %v827_v54, -1e+09 }
 0x1f9   : > { %v830_v59 = vmul.f32 %v828_v57, %v828_v57  ;;  %v831_v60 = vmul.f32 %v829_v58, %v829_v58 }
 0x1fa   : > { %v880_v61 = vadd.f32 %v879_v56, %v878_v55 }
 0x1fb   : > { %v832_v62 = vadd.f32 %v831_v60, %v830_v59 }
 0x1fc   : > { %v881_v63 = vsel %vm833_vm3, %v880_v61, -inf }
 0x1fd   : > { %882 = vmax.xlane.f32.xlu0 %v881_v63  ;;  %v834_v2 = vsel %vm833_vm3, %v832_v62, -inf }
 0x1fe   : > { %835 = vmax.xlane.f32.xlu1 %v834_v2 }
 0x286   : > { %v883_v3 = vpop.xlane.xlu0 %882 }
 0x287   : > { %v884_v4 = vsub.f32 %v880_v61, %v883_v3  ;;  %v836_v5 = vpop.xlane.xlu1 %835 }
 0x288   : > { %v837_v6 = vsub.f32 %v832_v62, %v836_v5 }
 0x289   : > { %v885_v7 = vmul.f32 1.442695, %v884_v4 }
 0x28a   : > { %v838_v8 = vmul.f32 1.442695, %v837_v6 }
 0x28c   : > { %1775 = vpow2.f32 %v838_v8 }
 0x28d   : > { %1777 = vpow2.f32 %v885_v7 }
 0x299   : > { %v1776_v9 = vpop.eup %1775 }
 0x29a   : > { %v840_v10 = vsel %vm833_vm3, %v1776_v9, 0.0  ;;  %v1778_v11 = vpop.eup %1777 }
 0x29b   : > { %841 = vadd.xlane.f32.xlu1 %v840_v10  ;;  %v887_v12 = vsel %vm833_vm3, %v1778_v11, 0.0 }
 0x29f   : > { %888 = vadd.xlane.f32.xlu1 %v887_v12 }
 0x324   : > { %v842_v13 = vpop.xlane.xlu1 %841 }
 0x325   : > { %1779 = vrcp.f32 %v842_v13 }
 0x328   : > { %v889_v14 = vpop.xlane.xlu1 %888 }
 0x329   : > { %1781 = vrcp.f32 %v889_v14 }
 0x332   : > { %v1780_v15 = vpop.eup %1779 }
 0x333   : > { %v844_v16 = vmul.f32 %v1780_v15, %v1776_v9 }
 0x335   : > { %845 = vst.msk [vmem:[#allocation2] sm:$0xff] %vm833_vm3, %v844_v16 }
 0x336   : > { %v1782_v17 = vpop.eup %1781 }
 0x337   : > { %v891_v18 = vmul.f32 %v1782_v17, %v1778_v11 }
 0x339   : > { %893 = vst.msk [vmem:[#allocation2 + $0x8] sm:$0xff] %vm833_vm3, %v891_v18 }
 0x33a PF: > { %v898_v19 = vpack.c.bf16 %v1992_v0, %v1992_v0  ;;  %vm911_vm9 = vcmask 1043456   ;;  %v899_v20 = vpack.c.bf16 %v1996_v1, %v1996_v1  ;;  %v896_v21 = vld [vmem:[%s2001_s13] sm:$0xff]  ;;  %v1850_v23 = vmov 0.0   ;;  %p1617_p5 = scmp.ne.s32.totalorder %s1824_s21, 2 }
 0x33b   : > { %1654 = vmatprep.subr.bf16.mxu0 %v1850_v23  ;;  %1660 = vmatprep.subr.bf16.mxu1 %v1850_v23  ;;  %v897_v25 = vld [vmem:[%s2006_s6] sm:$0xff]  ;;  %vm1851_vm10 = vmmov 0   ;;  %vm907_vm11 = vcmask 64512   ;;  %v900_v31 = vadd.f32 %v1996_v1, %v1992_v0  ;;  %vm1196_vm12 = vcmask 31744  }
 0x33c   : > { %v902_v22 = vld [vmem:[#allocation2] sm:$0xff]  ;;  %v913_v26 = vsel %vm911_vm9, %v898_v19, 0  ;;  %v960_v27 = vsel %vm911_vm9, %v899_v20, 0  ;;  %1656 = vmatprep.mubr.msk.bf16.mxu0 %vm1851_vm10, %v1850_v23  ;;  %1662 = vmatprep.mubr.msk.bf16.mxu1 %vm1851_vm10, %v1850_v23 }
 0x33d   : > { %v903_v24 = vmul.f32 %v902_v22, %v896_v21  ;;  %v904_v28 = vmul.f32 %v902_v22, %v897_v25  ;;  %1655 = vmatpush3.bf16.msra.mxu0 %v913_v26  ;;  %1661 = vmatpush3.bf16.msra.mxu1 %v960_v27  ;;  %v901_v33 = vpack.c.bf16 %v900_v31, %v900_v31  ;;  %v1205_v41 = vld [vmem:[%s576_s18] sm:$0xf]  ;;  %s1852_s18 = smov 4  }
 0x33e   : > { %1666 = vmatprep.subr.bf16.mxu0 %v1850_v23  ;;  %1672 = vmatprep.subr.bf16.mxu1 %v1850_v23  ;;  %v1210_v42 = vsel %vm911_vm9, %v1205_v41, 0  ;;  %v1253_v54 = vld [vmem:[%s580_s3] sm:$0xf] }
 0x33f   : > { %v906_v29 = vpack.c.bf16 %v903_v24, %v903_v24  ;;  %v955_v32 = vpack.c.bf16 %v904_v28, %v904_v28  ;;  %v905_v35 = vadd.f32 %v904_v28, %v903_v24  ;;  %v1007_v36 = vsel %vm911_vm9, %v901_v33, 0  ;;  %v1301_v13 = vld [vmem:[%s584_s24] sm:$0xf]  ;;  %v1348_v28 = vld [vmem:[#allocation3] sm:$0xff] }
 0x340   : > { %v1053_v30 = vld [vmem:[#allocation2 + $0x8] sm:$0xff]  ;;  %v1258_v56 = vsel %vm911_vm9, %v1253_v54, 0  ;;  %v1306_v17 = vsel %vm911_vm9, %v1301_v13, 0 }
 0x341   : > { %1657 = vmatmul.mubr.msk.bf16.vlgmr.msra.gmra.mxu0 %vm907_vm11, %v906_v29  ;;  %v1054_v34 = vmul.f32 %v1053_v30, %v896_v21  ;;  %1663 = vmatmul.mubr.msk.bf16.vlgmr.msra.gmra.mxu1 %vm907_vm11, %v955_v32  ;;  %v1055_v0 = vmul.f32 %v1053_v30, %v897_v25  ;;  %v1002_v1 = vpack.c.bf16 %v905_v35, %v905_v35  ;;  %v1352_v35 = vld [vmem:[#allocation4] sm:$0xff] }
 0x342   : > { %1673 = vmatpush3.bf16.msra.mxu1 %v913_v26  ;;  %1668 = vmatprep.mubr.msk.bf16.mxu0 %vm1851_vm10, %v1850_v23 }
 0x343   : > { %1667 = vmatpush3.bf16.msra.mxu0 %v1007_v36  ;;  %1674 = vmatprep.mubr.msk.bf16.mxu1 %vm1851_vm10, %v1850_v23  ;;  %v1057_v37 = vpack.c.bf16 %v1054_v34, %v1054_v34  ;;  %v1056_v38 = vadd.f32 %v1055_v0, %v1054_v34  ;;  %v1101_v39 = vpack.c.bf16 %v1055_v0, %v1055_v0 }
 0x344   : > { %1678 = vmatprep.subr.bf16.mxu0 %v1850_v23  ;;  %1684 = vmatprep.subr.bf16.mxu1 %v1850_v23 }
 0x345   : > { %v1145_v40 = vpack.c.bf16 %v1056_v38, %v1056_v38 }
 0x349   : > { %1669 = vmatmul.mubr.msk.bf16.vlgmr.msra.gmra.mxu0 %vm907_vm11, %v1002_v1  ;;  %1675 = vmatmul.mubr.msk.bf16.vlgmr.msra.gmra.mxu1 %vm907_vm11, %v1057_v37 }
 0x34a   : > { %1679 = vmatpush3.bf16.msra.mxu0 %v960_v27  ;;  %1685 = vmatpush3.bf16.msra.mxu1 %v1007_v36 }
 0x34b   : > { %1680 = vmatprep.mubr.msk.bf16.mxu0 %vm1851_vm10, %v1850_v23  ;;  %1686 = vmatprep.mubr.msk.bf16.mxu1 %vm1851_vm10, %v1850_v23 }
 0x34c   : > { %1690 = vmatprep.subr.bf16.mxu0 %v1850_v23  ;;  %1696 = vmatprep.subr.bf16.mxu1 %v1850_v23 }
 0x351   : > { %1681 = vmatmul.mubr.msk.bf16.vlgmr.msra.gmra.mxu0 %vm907_vm11, %v1101_v39  ;;  %1687 = vmatmul.mubr.msk.bf16.vlgmr.msra.gmra.mxu1 %vm907_vm11, %v1145_v40 }
 0x352   : > { %1692 = vmatprep.mubr.msk.bf16.mxu0 %vm1851_vm10, %v1850_v23  ;;  %1698 = vmatprep.mubr.msk.bf16.mxu1 %vm1851_vm10, %v1850_v23 }
 0x353   : > { %1691 = vmatpush3.bf16.msra.mxu0 %v1210_v42  ;;  %1697 = vmatpush3.bf16.msra.mxu1 %v1258_v56 }
 0x354   : > { %1702 = vmatprep.subr.bf16.mxu0 %v1850_v23 }
 0x401   : > { %v949_v43 = vpop.f32.mrf.mxu0  ;;  %v996_v44 = vpop.f32.mrf.mxu1 }
 0x402   : > { %v1049_v45 = vsub.f32 %v949_v43, %v996_v44 }
 0x403   : > { %v1658_v46 = vpop.f32.mrf.mxu0  ;;  %v1664_v47 = vpop.f32.mrf.mxu1 }
 0x405   : > { %v952_v48 = vpop.f32.mrf.mxu0  ;;  %v999_v49 = vpop.f32.mrf.mxu1 }
 0x407   : > { %v1659_v50 = vpop.f32.mrf.mxu0  ;;  %v1665_v51 = vpop.f32.mrf.mxu1 }
 0x409   : > { %v1043_v52 = vpop.f32.mrf.mxu0  ;;  %v1095_v53 = vpop.f32.mrf.mxu1 }
 0x40a   : > { %v1050_v55 = vsub.f32 %v1043_v52, %v949_v43 }
 0x40b   : > { %v1670_v57 = vpop.f32.mrf.mxu0  ;;  %v1676_v58 = vpop.f32.mrf.mxu1 }
 0x40c   : > { %v1051_v59 = vsub.f32 %v1050_v55, %v996_v44 }
 0x40d   : > { %v1046_v60 = vpop.f32.mrf.mxu0  ;;  %v1098_v61 = vpop.f32.mrf.mxu1 }
 0x40f   : > { %v1671_v62 = vpop.f32.mrf.mxu0  ;;  %v1677_v63 = vpop.f32.mrf.mxu1 }
 0x411   : > { %v1139_v2 = vpop.f32.mrf.mxu0  ;;  %v1183_v3 = vpop.f32.mrf.mxu1 }
 0x412   : > { %v1190_v4 = vsub.f32 %v1183_v3, %v1095_v53  ;;  %v1189_v5 = vsub.f32 %v1095_v53, %v1139_v2 }
 0x413   : > { %v1682_v6 = vpop.f32.mrf.mxu0  ;;  %v1688_v7 = vpop.f32.mrf.mxu1 }
 0x414   : > { %1193 = vrot.lane.b32.xlu0 %v1189_v5, %s1852_s18  ;;  %v1191_v10 = vsub.f32 %v1190_v4, %v1139_v2 }
 0x415   : > { %v1142_v8 = vpop.f32.mrf.mxu0  ;;  %v1186_v9 = vpop.f32.mrf.mxu1 }
 0x417   : > { %v1683_v11 = vpop.f32.mrf.mxu0  ;;  %v1689_v12 = vpop.f32.mrf.mxu1 }
 0x418   : > { %1199 = vrot.lane.b32.xlu0 %v1191_v10, %s1852_s18 }
 0x486   : > { %v1194_v14 = vpop.permute.xlu0 %1193 }
 0x487   : > { %v1197_v15 = vsel %vm1196_vm12, %v1049_v45, %v1194_v14 }
 0x488   : > { %v1204_v16 = vpack.c.bf16 %v1197_v15, %v1197_v15 }
 0x48a   : > { %1693 = vmatmul.mubr.msk.bf16.vlgmr.msra.gmra.mxu0 %vm907_vm11, %v1204_v16  ;;  %v1200_v18 = vpop.permute.xlu0 %1199 }
 0x48b   : > { %v1202_v19 = vsel %vm1196_vm12, %v1051_v59, %v1200_v18  ;;  %1703 = vmatpush3.bf16.msra.mxu0 %v1306_v17  ;;  %1704 = vmatprep.mubr.msk.bf16.mxu0 %vm1851_vm10, %v1850_v23 }
 0x48c   : > { %v1203_v20 = vadd.f32 %v1202_v19, %v1197_v15  ;;  %v1252_v21 = vpack.c.bf16 %v1202_v19, %v1202_v19 }
 0x48e   : > { %1699 = vmatmul.mubr.msk.bf16.vlgmr.msra.gmra.mxu1 %vm907_vm11, %v1252_v21  ;;  %v1300_v22 = vpack.c.bf16 %v1203_v20, %v1203_v20 }
 0x492   : > { %1705 = vmatmul.mubr.msk.bf16.vlgmr.msra.gmra.mxu0 %vm907_vm11, %v1300_v22 }
 0x54a   : > { %v1246_v24 = vpop.f32.mrf.mxu0 }
 0x54c   : > { %v1694_v25 = vpop.f32.mrf.mxu0 }
 0x54e   : > { %v1249_v26 = vpop.f32.mrf.mxu0  ;;  %v1294_v27 = vpop.f32.mrf.mxu1 }
 0x54f   : > { %v1349_v29 = vsub.f32 %v1246_v24, %v1294_v27 }
 0x550   : > { %v1695_v30 = vpop.f32.mrf.mxu0  ;;  %v1700_v31 = vpop.f32.mrf.mxu1 }
 0x551   : > { %v1350_v32 = vadd.f32 %v1349_v29, %v1348_v28 }
 0x552   : > { %v1297_v33 = vpop.f32.mrf.mxu1  ;;  %v1342_v34 = vpop.f32.mrf.mxu0 }
 0x553   : > { %1351 = vst.msk [vmem:[#allocation3] sm:$0xff] %vm907_vm11, %v1350_v32  ;;  %v1353_v23 = vsub.f32 %v1342_v34, %v1246_v24 }
 0x554   : > { %v1701_v36 = vpop.f32.mrf.mxu1  ;;  %v1706_v0 = vpop.f32.mrf.mxu0 }
 0x555   : > { %v1354_v1 = vsub.f32 %v1353_v23, %v1294_v27  ;;  %1360 = sbr.rel (%p1617_p5) target bundleno = 1380 (0x564), region = 76 }
 0x556   : > { %v1345_v37 = vpop.f32.mrf.mxu0 }
 0x557   : > { %v1355_v38 = vadd.f32 %v1354_v1, %v1352_v35 }
 0x558   : > { %v1707_v39 = vpop.f32.mrf.mxu0 }
 0x559   : > { %1356 = vst.msk [vmem:[#allocation4] sm:$0xff] %vm907_vm11, %v1355_v38 }
 0x55a   : > { %v1361_v40 = vld [vmem:[#allocation3] sm:$0xff]  ;;  %v1618_v41 = vld [vmem:[%s2174_s10] ss:$0 sm:$0xff]  ;;  %v1619_v44 = vld [vmem:[%s2174_s10 + $0x1] ss:$0 sm:$0xff] }
 0x55b   : > { %v1367_v43 = vadd.f32 %v1618_v41, %v1361_v40 }
 0x55d   : > { %1368 = vst.msk [vmem:[%s588_s0] sm:$0xff] %vm907_vm11, %v1367_v43 }
 0x560   : > { %v1369_v42 = vld [vmem:[#allocation4] sm:$0xff] }
 0x561   : > { %v1375_v45 = vadd.f32 %v1619_v44, %v1369_v42 }
 0x563   : > { %1376 = vst.msk [vmem:[%s592_s22] sm:$0xff] %vm907_vm11, %v1375_v45 }
 0x564 PF: > { %s24_s25 = sadd.s32 1, %s1840_s25   ;;  %s2194_s21 = sld [smem:[#allocation8_spill]] }
 0x565   : > { %p21_p6 = scmp.ge.s32.totalorder %s24_s25, 8   ;;  %s2195_s22 = sld [smem:[#allocation9_spill]] }
 0x566   : > { %s2196_s23 = sld [smem:[#allocation10_spill]] }
 0x567   : > { %s2197_s24 = sld [smem:[#allocation11_spill]]  ;;  %23 = sbr.rel (!%p21_p6) target bundleno = 8 (0x8), region = 142 }
 0x56c   :  { %1410 = vsyncpa [#allocation6], 1 }
 0x56d   :  { %1412 = vsyncpa [#allocation6 + $0x1], 1 }

// kernel: chebnet_forward.8
= control target key start
LH: loop header
LB: loop body
LE: loop exit
PB: predicated region body
PF: predicated region fallthrough
CT: control target
= control target key end

     0   :  { %s2185_s0 = inlined_call_operand.vmem [shape: f32[2,3,8,8], index: 0, kind: input, shape index: {}]   ;;  %s2186_s1 = inlined_call_operand.vmem [shape: f32[2,3,8,8], index: 1, kind: input, shape index: {}]   ;;  %s2187_s2 = inlined_call_operand.vmem [shape: f32[2,8,8], index: 2, kind: input, shape index: {}]   ;;  %s2188_s3 = inlined_call_operand.vmem [shape: f32[2,8,8], index: 3, kind: input, shape index: {}]   ;;  %s2189_s4 = inlined_call_operand.vmem [shape: f32[2,8,8], index: 4, kind: input, shape index: {}]   ;;  %s2190_s5 = inlined_call_operand.vmem [shape: f32[16,8], index: 5, kind: input, shape index: {}]   ;;  %s2191_s6 = inlined_call_operand.vmem [shape: f32[6], index: 6, kind: input, shape index: {}]   ;;  %s2192_s7 = inlined_call_operand.vmem [shape: bf16[3,16,8], index: 7, kind: input, shape index: {}]   ;;  %s2193_s8 = inlined_call_operand.vmem [shape: bf16[3,16,8], index: 8, kind: input, shape index: {}]   ;;  %s2194_s9 = inlined_call_operand.vmem [shape: bf16[3,16,8], index: 9, kind: input, shape index: {}]   ;;  %s2195_s10 = inlined_call_operand.vmem [shape: f32[2,8], index: 10, kind: input, shape index: {}]   ;;  %s2196_s11 = inlined_call_operand.vmem [shape: f32[2,8,8], index: 11, kind: output, shape index: {0}]   ;;  %s2197_s12 = inlined_call_operand.vmem [shape: f32[2,8,8], index: 12, kind: output, shape index: {1}]  }
   0x1   :  { %2200 = sst [smem:[#allocation12_spill]] %s2185_s0 }
   0x2   :  { %2201 = sst [smem:[#allocation13_spill]] %s2188_s3 }
   0x3   :  { %2202 = sst [smem:[#allocation14_spill]] %s2189_s4 }
   0x4   :  { %2203 = sst [smem:[#allocation15_spill]] %s2191_s6 }
   0x5   :  { %18 = vsyncpa [#allocation6], 0  ;;  %s1941_s21 = smov 0   ;;  %s1943_s22 = smov 0  }
   0x6   :  { %s1945_s23 = smov 0   ;;  %s1947_s24 = smov 0  }
   0x7   :  { %s1949_s25 = smov 0  }
   0x8 LB: > { %2204 = sst [smem:[#allocation8_spill]] %s1855_s23  ;;  %s1594_s26 = sadd.s32 4294967295, %s1863_s25   ;;  %s1863_s25 = sphi %s1949_s25, %s24_s25   ;;  %s1859_s24 = sphi %s1947_s24, %s2218_s24   ;;  %s1855_s23 = sphi %s1945_s23, %s2217_s23   ;;  %s1851_s22 = sphi %s1943_s22, %s2216_s22   ;;  %s1847_s21 = sphi %s1941_s21, %s2215_s21  }
   0x9   : > { %2205 = sst [smem:[#allocation9_spill]] %s1859_s24  ;;  %s33_s27 = sadd.s32 1, %s1855_s23 }
   0xa   : > { %p34_p0 = scmp.ge.s32.totalorder %s33_s27, 3  ;;  %s36_s28 = sadd.s32 1, %s1859_s24 }
   0xb   : > { %p1596_p1 = scmp.ge.s32.totalorder %s1863_s25, 1  ;;  %p368_p2 = scmp.lt.s32.totalorder %s1863_s25, 7 }
   0xc   : > { %s2220_s27 = smov (%p34_p0, %s33_s27), 0  ;;  %s2222_s28 = smov (!%p34_p0, %s36_s28), %s1859_s24 }
   0xd   : > { %2206 = sst [smem:[#allocation10_spill]] %s2220_s27  ;;  %p1974_p3 = pnand %p1596_p1, %p368_p2 }
   0xe   : > { %p38_p4 = scmp.ge.s32.totalorder %s2222_s28, 2  ;;  %p1978_p5 = scmp.eq.s32.totalorder %s1594_s26, 0 }
   0xf   : > { %p1733_p6 = pneg %p1974_p3  ;;  %s2209_s6 = sld [smem:[#allocation15_spill]] }
  0x10   : > { %s2224_s28 = smov (%p38_p4, %s2222_s28), 0 }
  0x11   : > { %2210 = sst [smem:[#allocation11_spill]] %s2224_s28  ;;  %p1734_p7 = pnand %p1978_p5, %p1733_p6 }
  0x13   : > { %p1808_p9 = pneg %p1734_p7 }
  0x15   : > { %s384_s15 = sshll.u32 %s2209_s6, 4  ;;  %s385_s15 = int_to_ptr.vmem [resolvable:$true] %s384_s15 }
  0x16   : > { %s1806_s16 = scalar_lea.vmem %s385_s15, 16  ;;  %p1814_p12 = scmp.lt.s32.totalorder %s385_s15, %s385_s15 }
  0x17   : > { %p1807_p8 = scmp.ne.s32.totalorder %s385_s15, %s1806_s16  ;;  %p1815_p13 = scmp.lt.s32.totalorder %s1806_s16, %s1806_s16 }
  0x19   : > { %p1809_p10 = pnand %p1808_p9, %p1807_p8  ;;  %p1816_p0 = por %p1815_p13, %p1814_p12 }
  0x1b   : > { %p1810_p11 = pneg %p1809_p10 }
  0x1d   : > { %p1817_p1 = pnand %p1816_p0, %p1810_p11 }
  0x1f   : > { %1820 = shalt.err (!%p1817_p1)
}
  0x20   : > { %s1865_s17 = smov [#allocation5]   ;;  %467 = sbr.rel (%p1974_p3) target bundleno = 1380 (0x564), region = 64 }
  0x21   : > { %1736 = dma.vmem_to_smem (!%p1734_p7), %s385_s15, 16, %s1865_s17, [#allocation6]  }
  0x25   : > { %1842 = dma.done.wait (%p1978_p5), [#allocation6], 16  }
  0x26   : > { %1844 = vsyncadd (%p1978_p5), [#allocation6], 4294967280 }
  0x27   : > { %473 = sfence }
  0x28   : > { %p551_p2 = scmp.lt.s32.totalorder %s1851_s22, 1  ;;  %p553_p4 = scmp.lt.s32.totalorder %s1847_s21, 2 }
  0x29   : > { %s2211_s3 = sld [smem:[#allocation13_spill]]  ;;  %p1614_p3 = scmp.ne.s32.totalorder %s1847_s21, 0 }
  0x2a   : > { %s2226_s22 = smov (!%p551_p2, %s1851_s22), 1  ;;  %s2212_s4 = sld [smem:[#allocation14_spill]] }
  0x2b   : > { %s554_s18 = scalar_select %p553_p4, %s1847_s21, 2 }
  0x2c   : > { %s1728_s19 = smul.u32 3, %s2226_s22  ;;  %s2001_s20 = sshll.u32 %s2226_s22, 3 }
  0x2d   : > { %s2017_s27 = sshll.u32 %s554_s18, 3  ;;  %s2213_s0 = sld [smem:[#allocation12_spill]] }
  0x2e   : > { %s556_s16 = sadd.s32 %s1728_s19, %s554_s18  ;;  %s583_s18 = scalar_lea.vmem %s2192_s7, %s2017_s27 }
  0x2f   : > { %s574_s15 = scalar_lea.vmem %s2211_s3, %s2001_s20  ;;  %s1601_s22 = sshll.u32 %s556_s16, 3 }
  0x30   : > { %s578_s28 = scalar_lea.vmem %s2212_s4, %s2001_s20  ;;  %v2015_v0 = vld [vmem:[%s574_s15] sm:$0xff]  ;;  %s2029_s6 = scalar_lea.vmem %s2186_s1, %s1601_s22 }
  0x31   : > { %v2019_v1 = vld [vmem:[%s578_s28] sm:$0xff]  ;;  %s588_s3 = scalar_lea.vmem %s2193_s8, %s2017_s27  ;;  %s593_s24 = scalar_lea.vmem %s2194_s9, %s2017_s27 }
  0x32   : > { %608 = sbr.rel (%p1614_p3) target bundleno = 826 (0x33a), region = 72  ;;  %s1870_s4 = smov (!%p1614_p3), 124  }
  0x33   : > { %s2024_s13 = scalar_lea.vmem %s2213_s0, %s1601_s22  ;;  %s597_s0 = scalar_lea.vmem %s2196_s11, %s2001_s20 }
  0x34   : > { %s601_s22 = scalar_lea.vmem %s2197_s12, %s2001_s20  ;;  %s2064_s23 = sld [smem:[#allocation5]] (!%p1614_p3) }
  0x35   : > { %s1619_s16 = sld [smem:[#allocation5 + $0x2]] (!%p1614_p3)  ;;  %s2214_s30 = scalar_lea.vmem (!%p1614_p3), %s2187_s2, %s2001_s20 }
  0x36   : > { %s1620_s28 = sld [smem:[#allocation5 + $0x1]] (!%p1614_p3) }
  0x37   : > { %vm611_vm0 = vcmask 64512   ;;  %v610_v2 = vld [vmem:[%s2190_s5 + $0x8] sm:$0xff]  ;;  %v609_v3 = vld [vmem:[%s2190_s5] sm:$0xff]  ;;  %v1866_v4 = vmov 0.0   ;;  %vm1867_vm1 = vmmov 0   ;;  %v1868_v5 = vmov 2  }
  0x38   : > { %1664 = vmatprep.subr.mxu0 %v1866_v4  ;;  %895 = vst.msk [vmem:[#allocation3] sm:$0xff] %vm611_vm0, %v1866_v4  ;;  %896 = vst.msk [vmem:[#allocation4] sm:$0xff] %vm611_vm0, %v1866_v4  ;;  %1669 = vmatprep.subr.mxu1 %v1866_v4  ;;  %v1869_v6 = vmov 0   ;;  %v1871_v12 = vmov 1   ;;  %v1872_v13 = vmov 3   ;;  %v802_v15 = vlaneseq  ;;  %s1621_s26 = sld [smem:[#allocation5 + $0x3]] }
  0x39   : > { %1665 = vmatpush3.msra.mxu0 %v610_v2  ;;  %1666 = vmatprep.mubr.msk.f32.mxu0 %vm1867_vm1, %v1866_v4  ;;  %s2066_s29 = sld [smem:[#allocation5 + $0x4]]  ;;  %v794_v38 = vld [vmem:[%s2214_s30] sm:$0xff] }
  0x3a   : > { %1670 = vmatpush3.msra.mxu1 %v609_v3  ;;  %1671 = vmatprep.mubr.msk.f32.mxu1 %vm1867_vm1, %v1866_v4  ;;  %v803_v17 = vshrl.u32 %v802_v15, 7  ;;  %s2068_s19 = sld [smem:[#allocation5 + $0x5]]  ;;  %v808_v30 = vstv %s2064_s23  ;;  %vm795_vm2 = vcmp.gt.f32.partialorder %v794_v38, 0.5 }
  0x3b   : > { %1667 = vmatmul.mubr.msk.f32.vlgmr.msra.gmra.mxu0 %vm611_vm0, %v2019_v1  ;;  %1672 = vmatmul.mubr.msk.f32.vlgmr.msra.gmra.mxu1 %vm611_vm0, %v2015_v0  ;;  %v820_v31 = vstv %s1619_s16 }
  0x3c   : > { %1791 = vset.pattern.permute.xlu1 %v1868_v5  ;;  %1790 = vset.pattern.permute.xlu0 %v1869_v6  ;;  %v804_v20 = vsub.s32 0, %v803_v17  ;;  %v816_v21 = vsub.s32 2, %v803_v17  ;;  %v853_v22 = vsub.s32 1, %v803_v17  ;;  %v865_v23 = vsub.s32 3, %v803_v17 }
  0x3d   : > { %v857_v32 = vstv %s1620_s28 }
  0x3e   : > { %v869_v33 = vstv %s1621_s26 }
  0x3f   : > { %v823_v39 = vstv %s2066_s29 }
  0x40   : > { %v827_v40 = vstv %s2068_s19 }
  0xfb   : > { %v681_v7 = vpop.f32.mrf.mxu0  ;;  %v754_v8 = vpop.f32.mrf.mxu1 }
  0xfc   : > { %v755_v9 = vadd.f32 %v754_v8, %v681_v7 }
  0xfd   : > { %v1668_v10 = vpop.f32.mrf.mxu0  ;;  %v1673_v11 = vpop.f32.mrf.mxu1 }
  0xfe   : > { %811 = vperm.xlu1 %1791, %v755_v9   ;;  %759 = vrot.lane.b32.xlu0 %v755_v9, %s1870_s4 }
 0x102   : > { %1792 = vset.pattern.permute.xlu1 %v1871_v12  ;;  %799 = vperm.xlu0 %1790, %v755_v9  }
 0x103   : > { %848 = vperm.xlu1 %1792, %v755_v9  }
 0x107   : > { %1793 = vset.pattern.permute.xlu1 %v1872_v13 }
 0x108   : > { %860 = vperm.xlu1 %1793, %v755_v9  }
 0x170   : > { %v760_v14 = vpop.permute.xlu0 %759 }
 0x171   : > { %762 = vxpose.xlu0.b32.start.end [1/1] (short) (narrow) %v760_v14, 8 }
 0x179   : > { %v812_v16 = vpop.permute.xlu1 %811 }
 0x17d   : > { %v800_v18 = vpop.permute.xlu0 %799 }
 0x17e   : > { %v849_v19 = vpop.permute.xlu1 %848 }
 0x183   : > { %v861_v29 = vpop.permute.xlu1 %860 }
 0x19a   : > { %1794 = vset.pattern.permute.xlu0 %v1872_v13 }
 0x1ed   : > { %v778_v24 = vpop.trf.xlu0 }
 0x1ee   : > { %v805_v25 = vrot.slane %v778_v24, %v804_v20  ;;  %v817_v26 = vrot.slane %v778_v24, %v816_v21  ;;  %v854_v27 = vrot.slane %v778_v24, %v853_v22  ;;  %v866_v28 = vrot.slane %v778_v24, %v865_v23 }
 0x1f0   : > { %v806_v34 = vadd.f32 %v805_v25, %v800_v18  ;;  %v818_v35 = vadd.f32 %v817_v26, %v812_v16  ;;  %v855_v36 = vadd.f32 %v854_v27, %v849_v19  ;;  %v867_v37 = vadd.f32 %v866_v28, %v861_v29 }
 0x1f2   : > { %v809_v41 = vadd.f32 %v808_v30, %v806_v34  ;;  %v821_v42 = vadd.f32 %v820_v31, %v818_v35  ;;  %v858_v43 = vadd.f32 %v857_v32, %v855_v36  ;;  %v870_v44 = vadd.f32 %v869_v33, %v867_v37 }
 0x1f4   : > { %vm871_vm3 = vcmp.gt.f32.partialorder %v858_v43, 0.0  ;;  %v872_v45 = vmul.f32 %v858_v43, %v823_v39  ;;  %vm874_vm4 = vcmp.gt.f32.partialorder %v870_v44, 0.0  ;;  %v875_v46 = vmul.f32 %v870_v44, %v827_v40 }
 0x1f5   : > { %vm822_vm5 = vcmp.gt.f32.partialorder %v809_v41, 0.0  ;;  %v824_v47 = vmul.f32 %v823_v39, %v809_v41  ;;  %vm826_vm6 = vcmp.gt.f32.partialorder %v821_v42, 0.0  ;;  %v828_v48 = vmul.f32 %v827_v40, %v821_v42 }
 0x1f6   : > { %v873_v49 = vsel %vm871_vm3, %v858_v43, %v872_v45  ;;  %v876_v50 = vsel %vm874_vm4, %v870_v44, %v875_v46 }
 0x1f7   : > { %v877_v51 = vsel %vm795_vm2, %v873_v49, -1e+09  ;;  %v878_v52 = vsel %vm795_vm2, %v876_v50, -1e+09  ;;  %v825_v53 = vsel %vm822_vm5, %v809_v41, %v824_v47  ;;  %v829_v54 = vsel %vm826_vm6, %v821_v42, %v828_v48 }
 0x1f8   : > { %v879_v55 = vmul.f32 %v877_v51, %v877_v51  ;;  %v880_v56 = vmul.f32 %v878_v52, %v878_v52  ;;  %v830_v57 = vsel %vm795_vm2, %v825_v53, -1e+09  ;;  %v831_v58 = vsel %vm795_vm2, %v829_v54, -1e+09 }
 0x1f9   : > { %v832_v59 = vmul.f32 %v830_v57, %v830_v57  ;;  %v833_v60 = vmul.f32 %v831_v58, %v831_v58 }
 0x1fa   : > { %v881_v61 = vadd.f32 %v880_v56, %v879_v55 }
 0x1fb   : > { %v834_v62 = vadd.f32 %v833_v60, %v832_v59 }
 0x1fc   : > { %v882_v63 = vsel %vm611_vm0, %v881_v61, -inf }
 0x1fd   : > { %883 = vmax.xlane.f32.xlu0 %v882_v63  ;;  %v835_v2 = vsel %vm611_vm0, %v834_v62, -inf }
 0x1fe   : > { %836 = vmax.xlane.f32.xlu1 %v835_v2 }
 0x286   : > { %v884_v3 = vpop.xlane.xlu0 %883 }
 0x287   : > { %v885_v4 = vsub.f32 %v881_v61, %v884_v3  ;;  %v837_v5 = vpop.xlane.xlu1 %836 }
 0x288   : > { %v838_v6 = vsub.f32 %v834_v62, %v837_v5 }
 0x289   : > { %v886_v7 = vmul.f32 1.442695, %v885_v4 }
 0x28a   : > { %v839_v8 = vmul.f32 1.442695, %v838_v6 }
 0x28c   : > { %1795 = vpow2.f32 %v839_v8 }
 0x28d   : > { %1797 = vpow2.f32 %v886_v7 }
 0x299   : > { %v1796_v9 = vpop.eup %1795 }
 0x29a   : > { %v841_v10 = vsel %vm611_vm0, %v1796_v9, 0.0  ;;  %v1798_v11 = vpop.eup %1797 }
 0x29b   : > { %842 = vadd.xlane.f32.xlu1 %v841_v10  ;;  %v888_v12 = vsel %vm611_vm0, %v1798_v11, 0.0 }
 0x29f   : > { %889 = vadd.xlane.f32.xlu1 %v888_v12 }
 0x324   : > { %v843_v13 = vpop.xlane.xlu1 %842 }
 0x325   : > { %1799 = vrcp.f32 %v843_v13 }
 0x328   : > { %v890_v14 = vpop.xlane.xlu1 %889 }
 0x329   : > { %1801 = vrcp.f32 %v890_v14 }
 0x332   : > { %v1800_v15 = vpop.eup %1799 }
 0x333   : > { %v845_v16 = vmul.f32 %v1800_v15, %v1796_v9 }
 0x335   : > { %846 = vst.msk [vmem:[#allocation2] sm:$0xff] %vm611_vm0, %v845_v16 }
 0x336   : > { %v1802_v17 = vpop.eup %1801 }
 0x337   : > { %v892_v18 = vmul.f32 %v1802_v17, %v1798_v11 }
 0x339   : > { %894 = vst.msk [vmem:[#allocation2 + $0x8] sm:$0xff] %vm611_vm0, %v892_v18 }
 0x33a PF: > { %v899_v19 = vpack.c.bf16 %v2015_v0, %v2015_v0  ;;  %vm912_vm7 = vcmask 1043456   ;;  %v900_v20 = vpack.c.bf16 %v2019_v1, %v2019_v1  ;;  %v897_v21 = vld [vmem:[%s2024_s13] sm:$0xff]  ;;  %v1873_v23 = vmov 0.0   ;;  %p1634_p5 = scmp.ne.s32.totalorder %s1847_s21, 2 }
 0x33b   : > { %1674 = vmatprep.subr.bf16.mxu0 %v1873_v23  ;;  %1680 = vmatprep.subr.bf16.mxu1 %v1873_v23  ;;  %vm908_vm8 = vcmask 64512   ;;  %v898_v26 = vld [vmem:[%s2029_s6] sm:$0xff]  ;;  %vm1874_vm9 = vmmov 0   ;;  %v901_v31 = vadd.f32 %v2019_v1, %v2015_v0  ;;  %vm1213_vm10 = vcmask 130048  }
 0x33c   : > { %v903_v22 = vld [vmem:[#allocation2] sm:$0xff]  ;;  %v914_v27 = vsel %vm912_vm7, %v899_v19, 0  ;;  %v961_v28 = vsel %vm912_vm7, %v900_v20, 0  ;;  %1676 = vmatprep.mubr.msk.bf16.mxu0 %vm1874_vm9, %v1873_v23  ;;  %1682 = vmatprep.mubr.msk.bf16.mxu1 %vm1874_vm9, %v1873_v23 }
 0x33d   : > { %v904_v24 = vmul.f32 %v903_v22, %v897_v21  ;;  %v905_v29 = vmul.f32 %v903_v22, %v898_v26  ;;  %1675 = vmatpush3.bf16.msra.mxu0 %v914_v27  ;;  %1681 = vmatpush3.bf16.msra.mxu1 %v961_v28  ;;  %v902_v33 = vpack.c.bf16 %v901_v31, %v901_v31  ;;  %v1803_v41 = vld [vmem:[%s583_s18] sm:$0xff]   ;;  %s1875_s18 = smov 8  }
 0x33e   : > { %1686 = vmatprep.subr.bf16.mxu0 %v1873_v23  ;;  %1692 = vmatprep.subr.bf16.mxu1 %v1873_v23  ;;  %v1804_v53 = vld [vmem:[%s588_s3] sm:$0xff]  }
 0x33f   : > { %v907_v30 = vpack.c.bf16 %v904_v24, %v904_v24  ;;  %v956_v32 = vpack.c.bf16 %v905_v29, %v905_v29  ;;  %v906_v35 = vadd.f32 %v905_v29, %v904_v24  ;;  %v1008_v36 = vsel %vm912_vm7, %v902_v33, 0  ;;  %v1805_v13 = vld [vmem:[%s593_s24] sm:$0xff]  }
 0x340   : > { %v1054_v25 = vld [vmem:[#allocation2 + $0x8] sm:$0xff] }
 0x341   : > { %1677 = vmatmul.mubr.msk.bf16.vlgmr.msra.gmra.mxu0 %vm908_vm8, %v907_v30  ;;  %v1055_v34 = vmul.f32 %v1054_v25, %v897_v21  ;;  %1683 = vmatmul.mubr.msk.bf16.vlgmr.msra.gmra.mxu1 %vm908_vm8, %v956_v32  ;;  %v1056_v0 = vmul.f32 %v1054_v25, %v898_v26  ;;  %v1003_v1 = vpack.c.bf16 %v906_v35, %v906_v35  ;;  %v1361_v25 = vld [vmem:[#allocation3] sm:$0xff] }
 0x342   : > { %1693 = vmatpush3.bf16.msra.mxu1 %v914_v27  ;;  %1688 = vmatprep.mubr.msk.bf16.mxu0 %vm1874_vm9, %v1873_v23 }
 0x343   : > { %1687 = vmatpush3.bf16.msra.mxu0 %v1008_v36  ;;  %1694 = vmatprep.mubr.msk.bf16.mxu1 %vm1874_vm9, %v1873_v23  ;;  %v1058_v37 = vpack.c.bf16 %v1055_v34, %v1055_v34  ;;  %v1057_v38 = vadd.f32 %v1056_v0, %v1055_v34  ;;  %v1102_v39 = vpack.c.bf16 %v1056_v0, %v1056_v0 }
 0x344   : > { %1698 = vmatprep.subr.bf16.mxu0 %v1873_v23  ;;  %1704 = vmatprep.subr.bf16.mxu1 %v1873_v23 }
 0x345   : > { %v1146_v40 = vpack.c.bf16 %v1057_v38, %v1057_v38 }
 0x349   : > { %1689 = vmatmul.mubr.msk.bf16.vlgmr.msra.gmra.mxu0 %vm908_vm8, %v1003_v1  ;;  %1695 = vmatmul.mubr.msk.bf16.vlgmr.msra.gmra.mxu1 %vm908_vm8, %v1058_v37 }
 0x34a   : > { %1699 = vmatpush3.bf16.msra.mxu0 %v961_v28  ;;  %1705 = vmatpush3.bf16.msra.mxu1 %v1008_v36 }
 0x34b   : > { %1700 = vmatprep.mubr.msk.bf16.mxu0 %vm1874_vm9, %v1873_v23  ;;  %1706 = vmatprep.mubr.msk.bf16.mxu1 %vm1874_vm9, %v1873_v23 }
 0x34c   : > { %1710 = vmatprep.subr.bf16.mxu0 %v1873_v23  ;;  %1716 = vmatprep.subr.bf16.mxu1 %v1873_v23 }
 0x351   : > { %1701 = vmatmul.mubr.msk.bf16.vlgmr.msra.gmra.mxu0 %vm908_vm8, %v1102_v39  ;;  %1707 = vmatmul.mubr.msk.bf16.vlgmr.msra.gmra.mxu1 %vm908_vm8, %v1146_v40 }
 0x352   : > { %1712 = vmatprep.mubr.msk.bf16.mxu0 %vm1874_vm9, %v1873_v23  ;;  %1718 = vmatprep.mubr.msk.bf16.mxu1 %vm1874_vm9, %v1873_v23 }
 0x353   : > { %1711 = vmatpush3.bf16.msra.mxu0 %v1803_v41  ;;  %1717 = vmatpush3.bf16.msra.mxu1 %v1804_v53 }
 0x354   : > { %1722 = vmatprep.subr.bf16.mxu0 %v1873_v23 }
 0x401   : > { %v950_v42 = vpop.f32.mrf.mxu0  ;;  %v997_v43 = vpop.f32.mrf.mxu1 }
 0x402   : > { %v1050_v44 = vsub.f32 %v950_v42, %v997_v43 }
 0x403   : > { %v1678_v45 = vpop.f32.mrf.mxu0  ;;  %v1684_v46 = vpop.f32.mrf.mxu1 }
 0x405   : > { %v953_v47 = vpop.f32.mrf.mxu0  ;;  %v1000_v48 = vpop.f32.mrf.mxu1 }
 0x407   : > { %v1679_v49 = vpop.f32.mrf.mxu0  ;;  %v1685_v50 = vpop.f32.mrf.mxu1 }
 0x409   : > { %v1044_v51 = vpop.f32.mrf.mxu0  ;;  %v1096_v52 = vpop.f32.mrf.mxu1 }
 0x40a   : > { %v1051_v54 = vsub.f32 %v1044_v51, %v950_v42 }
 0x40b   : > { %v1690_v55 = vpop.f32.mrf.mxu0  ;;  %v1696_v56 = vpop.f32.mrf.mxu1 }
 0x40c   : > { %v1052_v57 = vsub.f32 %v1051_v54, %v997_v43 }
 0x40d   : > { %v1047_v58 = vpop.f32.mrf.mxu0  ;;  %v1099_v59 = vpop.f32.mrf.mxu1 }
 0x40f   : > { %v1691_v60 = vpop.f32.mrf.mxu0  ;;  %v1697_v61 = vpop.f32.mrf.mxu1 }
 0x411   : > { %v1140_v62 = vpop.f32.mrf.mxu0  ;;  %v1184_v63 = vpop.f32.mrf.mxu1 }
 0x412   : > { %v1191_v2 = vsub.f32 %v1184_v63, %v1096_v52  ;;  %v1190_v3 = vsub.f32 %v1096_v52, %v1140_v62 }
 0x413   : > { %v1702_v4 = vpop.f32.mrf.mxu0  ;;  %v1708_v5 = vpop.f32.mrf.mxu1 }
 0x414   : > { %1194 = vrot.lane.b32.xlu0 %v1190_v3, %s1875_s18  ;;  %v1192_v8 = vsub.f32 %v1191_v2, %v1140_v62 }
 0x415   : > { %v1143_v6 = vpop.f32.mrf.mxu0  ;;  %v1187_v7 = vpop.f32.mrf.mxu1 }
 0x417   : > { %v1703_v9 = vpop.f32.mrf.mxu0  ;;  %v1709_v10 = vpop.f32.mrf.mxu1 }
 0x418   : > { %1199 = vrot.lane.b32.xlu0 %v1192_v8, %s1875_s18 }
 0x486   : > { %v1195_v11 = vpop.permute.xlu0 %1194 }
 0x487   : > { %v1197_v12 = vsel %vm908_vm8, %v1050_v44, %v1195_v11 }
 0x488   : > { %v1204_v14 = vpack.c.bf16 %v1197_v12, %v1197_v12 }
 0x48a   : > { %1713 = vmatmul.mubr.msk.bf16.vlgmr.msra.gmra.mxu0 %vm1213_vm10, %v1204_v14  ;;  %v1200_v15 = vpop.permute.xlu0 %1199 }
 0x48b   : > { %v1202_v16 = vsel %vm908_vm8, %v1052_v57, %v1200_v15  ;;  %1723 = vmatpush3.bf16.msra.mxu0 %v1805_v13  ;;  %1724 = vmatprep.mubr.msk.bf16.mxu0 %vm1874_vm9, %v1873_v23  ;;  %v1365_v23 = vld [vmem:[#allocation4] sm:$0xff] }
 0x48c   : > { %v1203_v17 = vadd.f32 %v1202_v16, %v1197_v12  ;;  %v1257_v18 = vpack.c.bf16 %v1202_v16, %v1202_v16 }
 0x48e   : > { %1719 = vmatmul.mubr.msk.bf16.vlgmr.msra.gmra.mxu1 %vm1213_vm10, %v1257_v18  ;;  %v1309_v19 = vpack.c.bf16 %v1203_v17, %v1203_v17 }
 0x492   : > { %1725 = vmatmul.mubr.msk.bf16.vlgmr.msra.gmra.mxu0 %vm1213_vm10, %v1309_v19 }
 0x54a   : > { %v1251_v20 = vpop.f32.mrf.mxu0 }
 0x54c   : > { %v1714_v21 = vpop.f32.mrf.mxu0 }
 0x54e   : > { %v1254_v22 = vpop.f32.mrf.mxu0  ;;  %v1303_v24 = vpop.f32.mrf.mxu1 }
 0x54f   : > { %v1362_v26 = vsub.f32 %v1251_v20, %v1303_v24 }
 0x550   : > { %v1715_v27 = vpop.f32.mrf.mxu0  ;;  %v1720_v28 = vpop.f32.mrf.mxu1 }
 0x551   : > { %v1363_v29 = vadd.f32 %v1362_v26, %v1361_v25 }
 0x552   : > { %v1306_v30 = vpop.f32.mrf.mxu1  ;;  %v1355_v31 = vpop.f32.mrf.mxu0 }
 0x553   : > { %1364 = vst.msk [vmem:[#allocation3] sm:$0xff] %vm908_vm8, %v1363_v29  ;;  %v1366_v32 = vsub.f32 %v1355_v31, %v1251_v20 }
 0x554   : > { %v1721_v33 = vpop.f32.mrf.mxu1  ;;  %v1726_v34 = vpop.f32.mrf.mxu0 }
 0x555   : > { %v1367_v35 = vsub.f32 %v1366_v32, %v1303_v24  ;;  %1373 = sbr.rel (%p1634_p5) target bundleno = 1380 (0x564), region = 76 }
 0x556   : > { %v1358_v36 = vpop.f32.mrf.mxu0 }
 0x557   : > { %v1368_v0 = vadd.f32 %v1367_v35, %v1365_v23 }
 0x558   : > { %v1727_v1 = vpop.f32.mrf.mxu0 }
 0x559   : > { %1369 = vst.msk [vmem:[#allocation4] sm:$0xff] %vm908_vm8, %v1368_v0 }
 0x55a   : > { %v1374_v37 = vld [vmem:[#allocation3] sm:$0xff]  ;;  %v1635_v38 = vld [vmem:[%s2195_s10] ss:$0 sm:$0xff]  ;;  %v1636_v41 = vld [vmem:[%s2195_s10 + $0x1] ss:$0 sm:$0xff] }
 0x55b   : > { %v1380_v40 = vadd.f32 %v1635_v38, %v1374_v37 }
 0x55d   : > { %1381 = vst.msk [vmem:[%s597_s0] sm:$0xff] %vm908_vm8, %v1380_v40 }
 0x560   : > { %v1382_v39 = vld [vmem:[#allocation4] sm:$0xff] }
 0x561   : > { %v1388_v42 = vadd.f32 %v1636_v41, %v1382_v39 }
 0x563   : > { %1389 = vst.msk [vmem:[%s601_s22] sm:$0xff] %vm908_vm8, %v1388_v42 }
 0x564 PF: > { %s24_s25 = sadd.s32 1, %s1863_s25   ;;  %s2215_s21 = sld [smem:[#allocation8_spill]] }
 0x565   : > { %p21_p6 = scmp.ge.s32.totalorder %s24_s25, 8   ;;  %s2216_s22 = sld [smem:[#allocation9_spill]] }
 0x566   : > { %s2217_s23 = sld [smem:[#allocation10_spill]] }
 0x567   : > { %s2218_s24 = sld [smem:[#allocation11_spill]]  ;;  %23 = sbr.rel (!%p21_p6) target bundleno = 8 (0x8), region = 142 }
 0x56c   :  { %1423 = vsyncpa [#allocation6], 1 }
 0x56d   :  { %1425 = vsyncpa [#allocation6 + $0x1], 1 }

</bundles_post_ra>
